<compile_context>
chip_gen: v7x
topology: tpu7x:2x2x1
jax: 0.10.0
libtpu: 0.0.40
codegen_flags: <defaults>
</compile_context>

<pallas_src>
import math

import jax
import jax.numpy as jnp
from jax.experimental import pallas as pl
from jax.experimental.pallas import tpu as pltpu


# ----------------------------------------------------------------------------
# Fused STConvBlock kernel: one grid step per batch element.
#   temporal GLU 1 -> (Align + ChebGraphConv + residual + ReLU) ->
#   temporal GLU 2 -> LayerNorm([V, c2], eps=1e-12)
# ----------------------------------------------------------------------------
def stconv_fused_kernel(x_ref, t1_w_ref, t1_b_ref, gso_ref, gc_wa_ref,
                        gc_ba_ref, gc_w_ref, gc_b_ref, t2_w_ref, t2_b_ref,
                        ln_g_ref, ln_b_ref, o_ref):
    _, T, V, _ = x_ref.shape
    Kt = t1_w_ref.shape[0]
    c0 = t1_w_ref.shape[2] // 2
    Ks, c1, _ = gc_w_ref.shape
    c2 = t2_w_ref.shape[2] // 2
    T1 = T - Kt + 1
    T2 = T1 - Kt + 1

    def temporal_glu(x_tvc, w_ref, b_ref, c_out):
        # Causal (Kt,1) conv + GLU.  The Align residual is pre-folded into the
        # p-half of tap Kt-1 (wrapper), so the output is simply p * sigmoid(q).
        # One fused (p|q) MXU push per tap.
        t_in, v, c_in = x_tvc.shape
        t_out = t_in - Kt + 1
        rows = t_out * v
        acc = jnp.dot(x_tvc[0:t_out].reshape(rows, c_in), w_ref[0],
                      preferred_element_type=jnp.float32)
        for k in range(1, Kt):                      # static, Kt is small
            acc = acc + jnp.dot(x_tvc[k:k + t_out].reshape(rows, c_in),
                                w_ref[k], preferred_element_type=jnp.float32)
        acc = acc + b_ref[...]
        p = acc[:, :c_out]
        q = acc[:, c_out:]
        return p * jax.nn.sigmoid(q)                # (rows, c_out)

    # ---- temporal conv 1 (GLU, align folded into weights) -------------------
    h1 = temporal_glu(x_ref[0], t1_w_ref, t1_b_ref, c0)        # (T1*V, c0)

    # ---- graph conv layer: Align + ChebGraphConv + residual, fused ReLU -----
    x0 = jnp.dot(h1, gc_wa_ref[...], preferred_element_type=jnp.float32)
    x0 = x0 + gc_ba_ref[...]                                   # (T1*V, c1)
    gc = jnp.dot(x0, gc_w_ref[0], preferred_element_type=jnp.float32)
    if Ks >= 2:
        # gso_ref is block-diagonal kron(I_T1, gso): one wide matmul applies
        # the graph shift to every time step at once.
        xk = jnp.dot(gso_ref[...], x0, preferred_element_type=jnp.float32)
        gc = gc + jnp.dot(xk, gc_w_ref[1], preferred_element_type=jnp.float32)
        x_prev2, x_prev1 = x0, xk
        for k in range(2, Ks):                      # Chebyshev recurrence
            xk = 2.0 * jnp.dot(gso_ref[...], x_prev1,
                               preferred_element_type=jnp.float32) - x_prev2
            gc = gc + jnp.dot(xk, gc_w_ref[k],
                              preferred_element_type=jnp.float32)
            x_prev2, x_prev1 = x_prev1, xk
    h2 = jnp.maximum(gc + gc_b_ref[...] + x0, 0.0)             # (T1*V, c1)

    # ---- temporal conv 2 (GLU, align folded into weights) -------------------
    h3 = temporal_glu(h2.reshape(T1, V, c1), t2_w_ref, t2_b_ref, c2)
    y = h3.reshape(T2, V, c2)

    # ---- LayerNorm over (V, c2), eps = 1e-12 (matches the module) -----------
    n = float(V * c2)
    mu = jnp.sum(jnp.sum(y, axis=2, keepdims=True), axis=1, keepdims=True) / n
    d = y - mu
    var = jnp.sum(jnp.sum(d * d, axis=2, keepdims=True), axis=1,
                  keepdims=True) / n
    o_ref[0] = d * jax.lax.rsqrt(var + 1e-12) * ln_g_ref[...] + ln_b_ref[...]


# ----------------------------------------------------------------------------
# STConvBlock forward wrapper (weight folding + one pallas_call).
# ----------------------------------------------------------------------------
def stconv_block_forward(x_nchw, p, Kt, Ks):
    B, c_in, T, V = x_nchw.shape
    c0 = p["t1_w"].shape[2] // 2
    c1 = p["gc_w"].shape[2]
    c2 = p["t2_w"].shape[2] // 2
    T1 = T - Kt + 1
    T2 = T1 - Kt + 1
    assert T2 >= 1, "sequence too short for two causal convs"
    assert V % 8 == 0, "kernel relies on sublane-aligned n_vertex"

    x = jnp.transpose(x_nchw, (0, 2, 3, 1)).astype(jnp.float32)   # (B,T,V,C)

    # Fold the temporal Align residual (1x1 conv / zero-pad / identity, all
    # expressed as x @ Wa + ba) into the p-half of the LAST causal tap:
    #   p + align(x)[Kt-1:]  ==  sum_k x_k @ (wp[k] + [k==Kt-1]*Wa) + (bp + ba)
    def fold_align(w, b, wa, ba, c_out):
        w = w.at[Kt - 1, :, :c_out].add(wa)
        b = b.at[:c_out].add(ba)
        return w, b.reshape(1, -1)

    t1_w, t1_b = fold_align(p["t1_w"], p["t1_b"], p["t1_wa"], p["t1_ba"], c0)
    t2_w, t2_b = fold_align(p["t2_w"], p["t2_b"], p["t2_wa"], p["t2_ba"], c2)

    # Block-diagonal gso so the Chebyshev vertex propagation of all T1 time
    # steps is done by a couple of wide matmuls inside the kernel.
    gso_block = jnp.kron(jnp.eye(T1, dtype=jnp.float32), p["gso"])

    gc_ba = p["gc_ba"].reshape(1, c1)
    gc_b = p["gc_b"].reshape(1, c1)

    out = pl.pallas_call(
        stconv_fused_kernel,
        out_shape=jax.ShapeDtypeStruct((B, T2, V, c2), jnp.float32),
        grid=(B,),
        in_specs=[
            pl.BlockSpec((1, T, V, c_in), lambda b: (b, 0, 0, 0)),
            pl.BlockSpec((Kt, c_in, 2 * c0), lambda b: (0, 0, 0)),
            pl.BlockSpec((1, 2 * c0), lambda b: (0, 0)),
            pl.BlockSpec((T1 * V, T1 * V), lambda b: (0, 0)),
            pl.BlockSpec((c0, c1), lambda b: (0, 0)),
            pl.BlockSpec((1, c1), lambda b: (0, 0)),
            pl.BlockSpec((Ks, c1, c1), lambda b: (0, 0, 0)),
            pl.BlockSpec((1, c1), lambda b: (0, 0)),
            pl.BlockSpec((Kt, c1, 2 * c2), lambda b: (0, 0, 0)),
            pl.BlockSpec((1, 2 * c2), lambda b: (0, 0)),
            pl.BlockSpec((V, c2), lambda b: (0, 0)),
            pl.BlockSpec((V, c2), lambda b: (0, 0)),
        ],
        out_specs=pl.BlockSpec((1, T2, V, c2), lambda b: (b, 0, 0, 0)),
        compiler_params=pltpu.CompilerParams(
            dimension_semantics=("parallel",),
            vmem_limit_bytes=32 * 1024 * 1024,
        ),
    )(x, t1_w, t1_b, gso_block, p["gc_wa"], gc_ba, p["gc_w"], gc_b,
      t2_w, t2_b, p["ln_g"], p["ln_b"])

    # TODO(synk): nn.Dropout is identity at inference time; no RNG masking.
    return jnp.transpose(out, (0, 3, 1, 2))                       # -> NCHW


# ----------------------------------------------------------------------------
# Pure-JAX reference (mirrors the PyTorch module) for validation.
# ----------------------------------------------------------------------------
def _ref_temporal_glu(x, w, b, wa, ba, Kt):
    c_out = w.shape[2] // 2
    T_out = x.shape[1] - Kt + 1
    conv = sum(jnp.einsum("btvc,cd->btvd", x[:, k:k + T_out], w[k])
               for k in range(Kt)) + b
    p_, q_ = conv[..., :c_out], conv[..., c_out:]
    x_res = jnp.einsum("btvc,co->btvo", x[:, Kt - 1:], wa) + ba
    return (p_ + x_res) * jax.nn.sigmoid(q_)


def _ref_cheb_layer(x, gso, wa, ba, cw, cb):
    Ks = cw.shape[0]
    x0 = jnp.einsum("btvc,co->btvo", x, wa) + ba
    xs = [x0]
    if Ks >= 2:
        xs.append(jnp.einsum("hi,btij->bthj", gso, x0))
        for k in range(2, Ks):
            xs.append(jnp.einsum("hi,btij->bthj", 2.0 * gso, xs[k - 1])
                      - xs[k - 2])
    gc = sum(jnp.einsum("btvi,io->btvo", xs[k], cw[k]) for k in range(Ks)) + cb
    return jnp.maximum(gc + x0, 0.0)


def _ref_layernorm(x, g, b, eps=1e-12):
    mu = jnp.mean(x, axis=(2, 3), keepdims=True)
    var = jnp.mean((x - mu) ** 2, axis=(2, 3), keepdims=True)
    return (x - mu) / jnp.sqrt(var + eps) * g + b


def stconv_block_reference(x_nchw, p, Kt, Ks):
    x = jnp.transpose(x_nchw, (0, 2, 3, 1)).astype(jnp.float32)
    x = _ref_temporal_glu(x, p["t1_w"], p["t1_b"], p["t1_wa"], p["t1_ba"], Kt)
    x = _ref_cheb_layer(x, p["gso"], p["gc_wa"], p["gc_ba"],
                        p["gc_w"], p["gc_b"])
    x = _ref_temporal_glu(x, p["t2_w"], p["t2_b"], p["t2_wa"], p["t2_ba"], Kt)
    x = _ref_layernorm(x, p["ln_g"], p["ln_b"])
    return jnp.transpose(x, (0, 3, 1, 2))


# ----------------------------------------------------------------------------
# Deterministic synthetic parameters (shapes follow the module's __init__).
# ----------------------------------------------------------------------------
def _uniform(key, shape, fan_in):
    bound = 1.0 / math.sqrt(max(fan_in, 1))
    return jax.random.uniform(key, shape, jnp.float32, -bound, bound)


def _make_align(key, c_in, c_out):
    # (wa, ba) such that x @ wa + ba reproduces Align.forward:
    #   c_in > c_out -> learned 1x1 conv; c_in <= c_out -> zero-pad / identity.
    if c_in > c_out:
        k1, k2 = jax.random.split(key)
        return _uniform(k1, (c_in, c_out), c_in), _uniform(k2, (c_out,), c_in)
    return (jnp.eye(c_in, c_out, dtype=jnp.float32),
            jnp.zeros((c_out,), jnp.float32))


def init_params(key, Kt, Ks, V, c_last, channels):
    c0, c1, c2 = channels
    ks = jax.random.split(key, 12)

    # temporal conv 1 (c_last -> c0, GLU => 2*c0 conv channels)
    t1_w = _uniform(ks[0], (Kt, c_last, 2 * c0), c_last * Kt)
    t1_b = _uniform(ks[1], (2 * c0,), c_last * Kt)
    t1_wa, t1_ba = _make_align(ks[2], c_last, c0)

    # graph conv layer: align c0 -> c1, Cheb weights (Ks, c1, c1)
    gc_wa, gc_ba = _make_align(ks[3], c0, c1)
    gc_w = _uniform(ks[4], (Ks, c1, c1), c1 * Ks)
    gc_b = _uniform(ks[5], (c1,), c1 * Ks)

    # temporal conv 2 (c1 -> c2, GLU)
    t2_w = _uniform(ks[6], (Kt, c1, 2 * c2), c1 * Kt)
    t2_b = _uniform(ks[7], (2 * c2,), c1 * Kt)
    t2_wa, t2_ba = _make_align(ks[8], c1, c2)

    # LayerNorm affine params over [n_vertex, channels[2]]
    ln_g = 1.0 + 0.1 * jax.random.uniform(ks[9], (V, c2), jnp.float32, -1., 1.)
    ln_b = 0.1 * jax.random.uniform(ks[10], (V, c2), jnp.float32, -1., 1.)

    # graph shift operator (deterministic symmetric row-normalized matrix)
    a = jax.random.uniform(ks[11], (V, V), jnp.float32, 0.0, 1.0)
    a = 0.5 * (a + a.T)
    gso = a / jnp.sum(a, axis=1, keepdims=True)

    return dict(t1_w=t1_w, t1_b=t1_b, t1_wa=t1_wa, t1_ba=t1_ba,
                gc_wa=gc_wa, gc_ba=gc_ba, gc_w=gc_w, gc_b=gc_b, gso=gso,
                t2_w=t2_w, t2_b=t2_b, t2_wa=t2_wa, t2_ba=t2_ba,
                ln_g=ln_g, ln_b=ln_b)


if __name__ == "__main__":
    B, T, V = 2, 12, 16
    last_block_channel = 4
    channels = [16, 8, 16]
    Kt, Ks = 3, 3

    key = jax.random.PRNGKey(0)
    kx, kp = jax.random.split(key)
    x = jax.random.normal(kx, (B, last_block_channel, T, V), jnp.float32)  # NCHW
    params = init_params(kp, Kt, Ks, V, last_block_channel, channels)

    out = jax.block_until_ready(stconv_block_forward(x, params, Kt, Ks))
    assert out.shape == (B, channels[2], T - 2 * (Kt - 1), V), out.shape

    ref = jax.block_until_ready(stconv_block_reference(x, params, Kt, Ks))
    if not bool(jnp.allclose(out, ref, rtol=1e-4, atol=1e-4)):
        max_err = float(jnp.max(jnp.abs(out - ref)))
        raise SystemExit(f"mismatch vs reference, max abs err = {max_err}")

    print("KERNEL_OK")
</pallas_src>

<mosaic_0001>
module attributes {stable_mosaic.version = 11 : i64} {
  func.func @stconv_fused_kernel(%arg0: i32, %arg1: memref<1x12x16x4xf32, #tpu.memory_space<vmem>>, %arg2: memref<3x4x32xf32, #tpu.memory_space<vmem>>, %arg3: memref<1x32xf32, #tpu.memory_space<vmem>>, %arg4: memref<160x160xf32, #tpu.memory_space<vmem>>, %arg5: memref<16x8xf32, #tpu.memory_space<vmem>>, %arg6: memref<1x8xf32, #tpu.memory_space<vmem>>, %arg7: memref<3x8x8xf32, #tpu.memory_space<vmem>>, %arg8: memref<1x8xf32, #tpu.memory_space<vmem>>, %arg9: memref<3x8x32xf32, #tpu.memory_space<vmem>>, %arg10: memref<1x32xf32, #tpu.memory_space<vmem>>, %arg11: memref<16x16xf32, #tpu.memory_space<vmem>>, %arg12: memref<16x16xf32, #tpu.memory_space<vmem>>, %arg13: memref<1x8x16x16xf32, #tpu.memory_space<vmem>>) attributes {dimension_semantics = [#tpu.dimension_semantics<parallel>], iteration_bounds = array<i64: 2>, scalar_prefetch = 0 : i64, scratch_operands = 0 : i64, tpu.core_type = #tpu.core_type<tc>, window_params = [{transform_indices = @transform_0, window_bounds = array<i64: 1, 12, 16, 4>}, {pipeline_mode = #tpu.pipeline_mode<synchronous>, transform_indices = @transform_1, window_bounds = array<i64: 3, 4, 32>}, {pipeline_mode = #tpu.pipeline_mode<synchronous>, transform_indices = @transform_2, window_bounds = array<i64: 1, 32>}, {pipeline_mode = #tpu.pipeline_mode<synchronous>, transform_indices = @transform_3, window_bounds = array<i64: 160, 160>}, {pipeline_mode = #tpu.pipeline_mode<synchronous>, transform_indices = @transform_4, window_bounds = array<i64: 16, 8>}, {pipeline_mode = #tpu.pipeline_mode<synchronous>, transform_indices = @transform_5, window_bounds = array<i64: 1, 8>}, {pipeline_mode = #tpu.pipeline_mode<synchronous>, transform_indices = @transform_6, window_bounds = array<i64: 3, 8, 8>}, {pipeline_mode = #tpu.pipeline_mode<synchronous>, transform_indices = @transform_7, window_bounds = array<i64: 1, 8>}, {pipeline_mode = #tpu.pipeline_mode<synchronous>, transform_indices = @transform_8, window_bounds = array<i64: 3, 8, 32>}, {pipeline_mode = #tpu.pipeline_mode<synchronous>, transform_indices = @transform_9, window_bounds = array<i64: 1, 32>}, {pipeline_mode = #tpu.pipeline_mode<synchronous>, transform_indices = @transform_10, window_bounds = array<i64: 16, 16>}, {pipeline_mode = #tpu.pipeline_mode<synchronous>, transform_indices = @transform_11, window_bounds = array<i64: 16, 16>}, {transform_indices = @transform_12, window_bounds = array<i64: 1, 8, 16, 16>}]} {
    %c0 = arith.constant 0 : index
    %c0_0 = arith.constant 0 : index
    %c0_1 = arith.constant 0 : index
    %c0_2 = arith.constant 0 : index
    %0 = vector.load %arg1[%c0, %c0_0, %c0_1, %c0_2] : memref<1x12x16x4xf32, #tpu.memory_space<vmem>>, vector<1x12x16x4xf32>
    %1 = vector.shape_cast %0 : vector<1x12x16x4xf32> to vector<12x16x4xf32>
    %2 = vector.extract_strided_slice %1 {offsets = [0, 0, 0], sizes = [10, 16, 4], strides = [1, 1, 1]} : vector<12x16x4xf32> to vector<10x16x4xf32>
    %3 = vector.shape_cast %2 : vector<10x16x4xf32> to vector<160x4xf32>
    %c0_3 = arith.constant 0 : index
    %c0_4 = arith.constant 0 : index
    %c0_5 = arith.constant 0 : index
    %4 = vector.load %arg2[%c0_3, %c0_4, %c0_5] : memref<3x4x32xf32, #tpu.memory_space<vmem>>, vector<1x4x32xf32>
    %5 = vector.shape_cast %4 : vector<1x4x32xf32> to vector<4x32xf32>
    %cst = arith.constant dense<0.000000e+00> : vector<160x32xf32>
    %6 = tpu.matmul %3, %5, %cst {dimension_numbers = #tpu.dot_dimension_numbers<[1], [0], [0], [1], [0, 0, 1, 1], [], []>} : vector<160x4xf32>, vector<4x32xf32>, vector<160x32xf32> -> vector<160x32xf32>
    %7 = vector.extract_strided_slice %1 {offsets = [1, 0, 0], sizes = [10, 16, 4], strides = [1, 1, 1]} : vector<12x16x4xf32> to vector<10x16x4xf32>
    %8 = vector.shape_cast %7 : vector<10x16x4xf32> to vector<160x4xf32>
    %c1 = arith.constant 1 : index
    %c0_6 = arith.constant 0 : index
    %c0_7 = arith.constant 0 : index
    %9 = vector.load %arg2[%c1, %c0_6, %c0_7] : memref<3x4x32xf32, #tpu.memory_space<vmem>>, vector<1x4x32xf32>
    %10 = vector.shape_cast %9 : vector<1x4x32xf32> to vector<4x32xf32>
    %cst_8 = arith.constant dense<0.000000e+00> : vector<160x32xf32>
    %11 = tpu.matmul %8, %10, %cst_8 {dimension_numbers = #tpu.dot_dimension_numbers<[1], [0], [0], [1], [0, 0, 1, 1], [], []>} : vector<160x4xf32>, vector<4x32xf32>, vector<160x32xf32> -> vector<160x32xf32>
    %12 = arith.addf %6, %11 : vector<160x32xf32>
    %13 = vector.extract_strided_slice %1 {offsets = [2, 0, 0], sizes = [10, 16, 4], strides = [1, 1, 1]} : vector<12x16x4xf32> to vector<10x16x4xf32>
    %14 = vector.shape_cast %13 : vector<10x16x4xf32> to vector<160x4xf32>
    %c2 = arith.constant 2 : index
    %c0_9 = arith.constant 0 : index
    %c0_10 = arith.constant 0 : index
    %15 = vector.load %arg2[%c2, %c0_9, %c0_10] : memref<3x4x32xf32, #tpu.memory_space<vmem>>, vector<1x4x32xf32>
    %16 = vector.shape_cast %15 : vector<1x4x32xf32> to vector<4x32xf32>
    %cst_11 = arith.constant dense<0.000000e+00> : vector<160x32xf32>
    %17 = tpu.matmul %14, %16, %cst_11 {dimension_numbers = #tpu.dot_dimension_numbers<[1], [0], [0], [1], [0, 0, 1, 1], [], []>} : vector<160x4xf32>, vector<4x32xf32>, vector<160x32xf32> -> vector<160x32xf32>
    %18 = arith.addf %12, %17 : vector<160x32xf32>
    %c0_12 = arith.constant 0 : index
    %c0_13 = arith.constant 0 : index
    %19 = vector.load %arg3[%c0_12, %c0_13] : memref<1x32xf32, #tpu.memory_space<vmem>>, vector<1x32xf32>
    %20 = vector.broadcast %19 : vector<1x32xf32> to vector<160x32xf32>
    %21 = arith.addf %18, %20 : vector<160x32xf32>
    %22 = vector.extract_strided_slice %21 {offsets = [0, 0], sizes = [160, 16], strides = [1, 1]} : vector<160x32xf32> to vector<160x16xf32>
    %23 = vector.extract_strided_slice %21 {offsets = [0, 16], sizes = [160, 16], strides = [1, 1]} : vector<160x32xf32> to vector<160x16xf32>
    %24 = arith.negf %23 : vector<160x16xf32>
    %25 = math.exp %24 : vector<160x16xf32>
    %cst_14 = arith.constant 1.000000e+00 : f32
    %26 = vector.broadcast %cst_14 : f32 to vector<160x16xf32>
    %27 = arith.addf %26, %25 : vector<160x16xf32>
    %28 = arith.divf %26, %27 : vector<160x16xf32>
    %29 = arith.mulf %22, %28 : vector<160x16xf32>
    %c0_15 = arith.constant 0 : index
    %c0_16 = arith.constant 0 : index
    %30 = vector.load %arg5[%c0_15, %c0_16] : memref<16x8xf32, #tpu.memory_space<vmem>>, vector<16x8xf32>
    %cst_17 = arith.constant dense<0.000000e+00> : vector<160x8xf32>
    %31 = tpu.matmul %29, %30, %cst_17 {dimension_numbers = #tpu.dot_dimension_numbers<[1], [0], [0], [1], [0, 0, 1, 1], [], []>} : vector<160x16xf32>, vector<16x8xf32>, vector<160x8xf32> -> vector<160x8xf32>
    %c0_18 = arith.constant 0 : index
    %c0_19 = arith.constant 0 : index
    %32 = vector.load %arg6[%c0_18, %c0_19] : memref<1x8xf32, #tpu.memory_space<vmem>>, vector<1x8xf32>
    %33 = vector.broadcast %32 : vector<1x8xf32> to vector<160x8xf32>
    %34 = arith.addf %31, %33 : vector<160x8xf32>
    %c0_20 = arith.constant 0 : index
    %c0_21 = arith.constant 0 : index
    %c0_22 = arith.constant 0 : index
    %35 = vector.load %arg7[%c0_20, %c0_21, %c0_22] : memref<3x8x8xf32, #tpu.memory_space<vmem>>, vector<1x8x8xf32>
    %36 = vector.shape_cast %35 : vector<1x8x8xf32> to vector<8x8xf32>
    %cst_23 = arith.constant dense<0.000000e+00> : vector<160x8xf32>
    %37 = tpu.matmul %34, %36, %cst_23 {dimension_numbers = #tpu.dot_dimension_numbers<[1], [0], [0], [1], [0, 0, 1, 1], [], []>} : vector<160x8xf32>, vector<8x8xf32>, vector<160x8xf32> -> vector<160x8xf32>
    %c0_24 = arith.constant 0 : index
    %c0_25 = arith.constant 0 : index
    %38 = vector.load %arg4[%c0_24, %c0_25] : memref<160x160xf32, #tpu.memory_space<vmem>>, vector<160x160xf32>
    %cst_26 = arith.constant dense<0.000000e+00> : vector<160x8xf32>
    %39 = tpu.matmul %38, %34, %cst_26 {dimension_numbers = #tpu.dot_dimension_numbers<[1], [0], [0], [1], [0, 0, 1, 1], [], []>} : vector<160x160xf32>, vector<160x8xf32>, vector<160x8xf32> -> vector<160x8xf32>
    %c1_27 = arith.constant 1 : index
    %c0_28 = arith.constant 0 : index
    %c0_29 = arith.constant 0 : index
    %40 = vector.load %arg7[%c1_27, %c0_28, %c0_29] : memref<3x8x8xf32, #tpu.memory_space<vmem>>, vector<1x8x8xf32>
    %41 = vector.shape_cast %40 : vector<1x8x8xf32> to vector<8x8xf32>
    %cst_30 = arith.constant dense<0.000000e+00> : vector<160x8xf32>
    %42 = tpu.matmul %39, %41, %cst_30 {dimension_numbers = #tpu.dot_dimension_numbers<[1], [0], [0], [1], [0, 0, 1, 1], [], []>} : vector<160x8xf32>, vector<8x8xf32>, vector<160x8xf32> -> vector<160x8xf32>
    %43 = arith.addf %37, %42 : vector<160x8xf32>
    %c0_31 = arith.constant 0 : index
    %c0_32 = arith.constant 0 : index
    %44 = vector.load %arg4[%c0_31, %c0_32] : memref<160x160xf32, #tpu.memory_space<vmem>>, vector<160x160xf32>
    %cst_33 = arith.constant dense<0.000000e+00> : vector<160x8xf32>
    %45 = tpu.matmul %44, %39, %cst_33 {dimension_numbers = #tpu.dot_dimension_numbers<[1], [0], [0], [1], [0, 0, 1, 1], [], []>} : vector<160x160xf32>, vector<160x8xf32>, vector<160x8xf32> -> vector<160x8xf32>
    %cst_34 = arith.constant 2.000000e+00 : f32
    %46 = vector.broadcast %cst_34 : f32 to vector<160x8xf32>
    %47 = arith.mulf %46, %45 : vector<160x8xf32>
    %48 = arith.subf %47, %34 : vector<160x8xf32>
    %c2_35 = arith.constant 2 : index
    %c0_36 = arith.constant 0 : index
    %c0_37 = arith.constant 0 : index
    %49 = vector.load %arg7[%c2_35, %c0_36, %c0_37] : memref<3x8x8xf32, #tpu.memory_space<vmem>>, vector<1x8x8xf32>
    %50 = vector.shape_cast %49 : vector<1x8x8xf32> to vector<8x8xf32>
    %cst_38 = arith.constant dense<0.000000e+00> : vector<160x8xf32>
    %51 = tpu.matmul %48, %50, %cst_38 {dimension_numbers = #tpu.dot_dimension_numbers<[1], [0], [0], [1], [0, 0, 1, 1], [], []>} : vector<160x8xf32>, vector<8x8xf32>, vector<160x8xf32> -> vector<160x8xf32>
    %52 = arith.addf %43, %51 : vector<160x8xf32>
    %c0_39 = arith.constant 0 : index
    %c0_40 = arith.constant 0 : index
    %53 = vector.load %arg8[%c0_39, %c0_40] : memref<1x8xf32, #tpu.memory_space<vmem>>, vector<1x8xf32>
    %54 = vector.broadcast %53 : vector<1x8xf32> to vector<160x8xf32>
    %55 = arith.addf %52, %54 : vector<160x8xf32>
    %56 = arith.addf %55, %34 : vector<160x8xf32>
    %cst_41 = arith.constant 0.000000e+00 : f32
    %57 = vector.broadcast %cst_41 : f32 to vector<160x8xf32>
    %58 = arith.maximumf %56, %57 : vector<160x8xf32>
    %59 = vector.shape_cast %58 : vector<160x8xf32> to vector<10x16x8xf32>
    %60 = vector.extract_strided_slice %59 {offsets = [0, 0, 0], sizes = [8, 16, 8], strides = [1, 1, 1]} : vector<10x16x8xf32> to vector<8x16x8xf32>
    %61 = vector.shape_cast %60 : vector<8x16x8xf32> to vector<128x8xf32>
    %c0_42 = arith.constant 0 : index
    %c0_43 = arith.constant 0 : index
    %c0_44 = arith.constant 0 : index
    %62 = vector.load %arg9[%c0_42, %c0_43, %c0_44] : memref<3x8x32xf32, #tpu.memory_space<vmem>>, vector<1x8x32xf32>
    %63 = vector.shape_cast %62 : vector<1x8x32xf32> to vector<8x32xf32>
    %cst_45 = arith.constant dense<0.000000e+00> : vector<128x32xf32>
    %64 = tpu.matmul %61, %63, %cst_45 {dimension_numbers = #tpu.dot_dimension_numbers<[1], [0], [0], [1], [0, 0, 1, 1], [], []>} : vector<128x8xf32>, vector<8x32xf32>, vector<128x32xf32> -> vector<128x32xf32>
    %65 = vector.extract_strided_slice %59 {offsets = [1, 0, 0], sizes = [8, 16, 8], strides = [1, 1, 1]} : vector<10x16x8xf32> to vector<8x16x8xf32>
    %66 = vector.shape_cast %65 : vector<8x16x8xf32> to vector<128x8xf32>
    %c1_46 = arith.constant 1 : index
    %c0_47 = arith.constant 0 : index
    %c0_48 = arith.constant 0 : index
    %67 = vector.load %arg9[%c1_46, %c0_47, %c0_48] : memref<3x8x32xf32, #tpu.memory_space<vmem>>, vector<1x8x32xf32>
    %68 = vector.shape_cast %67 : vector<1x8x32xf32> to vector<8x32xf32>
    %cst_49 = arith.constant dense<0.000000e+00> : vector<128x32xf32>
    %69 = tpu.matmul %66, %68, %cst_49 {dimension_numbers = #tpu.dot_dimension_numbers<[1], [0], [0], [1], [0, 0, 1, 1], [], []>} : vector<128x8xf32>, vector<8x32xf32>, vector<128x32xf32> -> vector<128x32xf32>
    %70 = arith.addf %64, %69 : vector<128x32xf32>
    %71 = vector.extract_strided_slice %59 {offsets = [2, 0, 0], sizes = [8, 16, 8], strides = [1, 1, 1]} : vector<10x16x8xf32> to vector<8x16x8xf32>
    %72 = vector.shape_cast %71 : vector<8x16x8xf32> to vector<128x8xf32>
    %c2_50 = arith.constant 2 : index
    %c0_51 = arith.constant 0 : index
    %c0_52 = arith.constant 0 : index
    %73 = vector.load %arg9[%c2_50, %c0_51, %c0_52] : memref<3x8x32xf32, #tpu.memory_space<vmem>>, vector<1x8x32xf32>
    %74 = vector.shape_cast %73 : vector<1x8x32xf32> to vector<8x32xf32>
    %cst_53 = arith.constant dense<0.000000e+00> : vector<128x32xf32>
    %75 = tpu.matmul %72, %74, %cst_53 {dimension_numbers = #tpu.dot_dimension_numbers<[1], [0], [0], [1], [0, 0, 1, 1], [], []>} : vector<128x8xf32>, vector<8x32xf32>, vector<128x32xf32> -> vector<128x32xf32>
    %76 = arith.addf %70, %75 : vector<128x32xf32>
    %c0_54 = arith.constant 0 : index
    %c0_55 = arith.constant 0 : index
    %77 = vector.load %arg10[%c0_54, %c0_55] : memref<1x32xf32, #tpu.memory_space<vmem>>, vector<1x32xf32>
    %78 = vector.broadcast %77 : vector<1x32xf32> to vector<128x32xf32>
    %79 = arith.addf %76, %78 : vector<128x32xf32>
    %80 = vector.extract_strided_slice %79 {offsets = [0, 0], sizes = [128, 16], strides = [1, 1]} : vector<128x32xf32> to vector<128x16xf32>
    %81 = vector.extract_strided_slice %79 {offsets = [0, 16], sizes = [128, 16], strides = [1, 1]} : vector<128x32xf32> to vector<128x16xf32>
    %82 = arith.negf %81 : vector<128x16xf32>
    %83 = math.exp %82 : vector<128x16xf32>
    %cst_56 = arith.constant 1.000000e+00 : f32
    %84 = vector.broadcast %cst_56 : f32 to vector<128x16xf32>
    %85 = arith.addf %84, %83 : vector<128x16xf32>
    %86 = arith.divf %84, %85 : vector<128x16xf32>
    %87 = arith.mulf %80, %86 : vector<128x16xf32>
    %88 = vector.shape_cast %87 : vector<128x16xf32> to vector<8x16x16xf32>
    %cst_57 = arith.constant dense<0.000000e+00> : vector<8x16xf32>
    %89 = vector.multi_reduction <add>, %88, %cst_57 [2] : vector<8x16x16xf32> to vector<8x16xf32>
    %90 = vector.shape_cast %89 : vector<8x16xf32> to vector<8x16x1xf32>
    %cst_58 = arith.constant dense<0.000000e+00> : vector<8x1xf32>
    %91 = vector.multi_reduction <add>, %90, %cst_58 [1] : vector<8x16x1xf32> to vector<8x1xf32>
    %92 = vector.shape_cast %91 : vector<8x1xf32> to vector<8x1x1xf32>
    %cst_59 = arith.constant 2.560000e+02 : f32
    %93 = vector.broadcast %cst_59 : f32 to vector<8x1x1xf32>
    %94 = arith.divf %92, %93 : vector<8x1x1xf32>
    %95 = vector.broadcast %94 : vector<8x1x1xf32> to vector<8x16x16xf32>
    %96 = arith.subf %88, %95 : vector<8x16x16xf32>
    %97 = arith.mulf %96, %96 : vector<8x16x16xf32>
    %cst_60 = arith.constant dense<0.000000e+00> : vector<8x16xf32>
    %98 = vector.multi_reduction <add>, %97, %cst_60 [2] : vector<8x16x16xf32> to vector<8x16xf32>
    %99 = vector.shape_cast %98 : vector<8x16xf32> to vector<8x16x1xf32>
    %cst_61 = arith.constant dense<0.000000e+00> : vector<8x1xf32>
    %100 = vector.multi_reduction <add>, %99, %cst_61 [1] : vector<8x16x1xf32> to vector<8x1xf32>
    %101 = vector.shape_cast %100 : vector<8x1xf32> to vector<8x1x1xf32>
    %cst_62 = arith.constant 2.560000e+02 : f32
    %102 = vector.broadcast %cst_62 : f32 to vector<8x1x1xf32>
    %103 = arith.divf %101, %102 : vector<8x1x1xf32>
    %cst_63 = arith.constant 9.99999996E-13 : f32
    %104 = vector.broadcast %cst_63 : f32 to vector<8x1x1xf32>
    %105 = arith.addf %103, %104 : vector<8x1x1xf32>
    %106 = math.rsqrt %105 : vector<8x1x1xf32>
    %107 = vector.broadcast %106 : vector<8x1x1xf32> to vector<8x16x16xf32>
    %108 = arith.mulf %96, %107 : vector<8x16x16xf32>
    %c0_64 = arith.constant 0 : index
    %c0_65 = arith.constant 0 : index
    %109 = vector.load %arg11[%c0_64, %c0_65] : memref<16x16xf32, #tpu.memory_space<vmem>>, vector<16x16xf32>
    %110 = vector.shape_cast %109 : vector<16x16xf32> to vector<1x16x16xf32>
    %111 = vector.broadcast %110 : vector<1x16x16xf32> to vector<8x16x16xf32>
    %112 = arith.mulf %108, %111 : vector<8x16x16xf32>
    %c0_66 = arith.constant 0 : index
    %c0_67 = arith.constant 0 : index
    %113 = vector.load %arg12[%c0_66, %c0_67] : memref<16x16xf32, #tpu.memory_space<vmem>>, vector<16x16xf32>
    %114 = vector.shape_cast %113 : vector<16x16xf32> to vector<1x16x16xf32>
    %115 = vector.broadcast %114 : vector<1x16x16xf32> to vector<8x16x16xf32>
    %116 = arith.addf %112, %115 : vector<8x16x16xf32>
    %c0_68 = arith.constant 0 : index
    %c0_69 = arith.constant 0 : index
    %c0_70 = arith.constant 0 : index
    %c0_71 = arith.constant 0 : index
    %117 = vector.load %arg13[%c0_68, %c0_69, %c0_70, %c0_71] : memref<1x8x16x16xf32, #tpu.memory_space<vmem>>, vector<1x8x16x16xf32>
    %118 = vector.shape_cast %117 : vector<1x8x16x16xf32> to vector<8x16x16xf32>
    %119 = vector.shape_cast %116 : vector<8x16x16xf32> to vector<1x8x16x16xf32>
    tpu.vector_store %arg13[%c0_68, %c0_69, %c0_70, %c0_71], %119 {strides = array<i32>} : memref<1x8x16x16xf32, #tpu.memory_space<vmem>>, vector<1x8x16x16xf32>,
    return
  }
  func.func @transform_0(%arg0: i32) -> (i32, i32, i32, i32) {
    %c0_i32 = arith.constant 0 : i32
    %c0_i32_0 = arith.constant 0 : i32
    %c0_i32_1 = arith.constant 0 : i32
    %c0_i32_2 = arith.constant 0 : i32
    return %arg0, %c0_i32, %c0_i32_0, %c0_i32_1 : i32, i32, i32, i32
  }
  func.func @transform_1(%arg0: i32) -> (i32, i32, i32) {
    %c0_i32 = arith.constant 0 : i32
    %c0_i32_0 = arith.constant 0 : i32
    %c0_i32_1 = arith.constant 0 : i32
    %c0_i32_2 = arith.constant 0 : i32
    return %c0_i32, %c0_i32_0, %c0_i32_1 : i32, i32, i32
  }
  func.func @transform_2(%arg0: i32) -> (i32, i32) {
    %c0_i32 = arith.constant 0 : i32
    %c0_i32_0 = arith.constant 0 : i32
    %c0_i32_1 = arith.constant 0 : i32
    return %c0_i32, %c0_i32_0 : i32, i32
  }
  func.func @transform_3(%arg0: i32) -> (i32, i32) {
    %c0_i32 = arith.constant 0 : i32
    %c0_i32_0 = arith.constant 0 : i32
    %c0_i32_1 = arith.constant 0 : i32
    return %c0_i32, %c0_i32_0 : i32, i32
  }
  func.func @transform_4(%arg0: i32) -> (i32, i32) {
    %c0_i32 = arith.constant 0 : i32
    %c0_i32_0 = arith.constant 0 : i32
    %c0_i32_1 = arith.constant 0 : i32
    return %c0_i32, %c0_i32_0 : i32, i32
  }
  func.func @transform_5(%arg0: i32) -> (i32, i32) {
    %c0_i32 = arith.constant 0 : i32
    %c0_i32_0 = arith.constant 0 : i32
    %c0_i32_1 = arith.constant 0 : i32
    return %c0_i32, %c0_i32_0 : i32, i32
  }
  func.func @transform_6(%arg0: i32) -> (i32, i32, i32) {
    %c0_i32 = arith.constant 0 : i32
    %c0_i32_0 = arith.constant 0 : i32
    %c0_i32_1 = arith.constant 0 : i32
    %c0_i32_2 = arith.constant 0 : i32
    return %c0_i32, %c0_i32_0, %c0_i32_1 : i32, i32, i32
  }
  func.func @transform_7(%arg0: i32) -> (i32, i32) {
    %c0_i32 = arith.constant 0 : i32
    %c0_i32_0 = arith.constant 0 : i32
    %c0_i32_1 = arith.constant 0 : i32
    return %c0_i32, %c0_i32_0 : i32, i32
  }
  func.func @transform_8(%arg0: i32) -> (i32, i32, i32) {
    %c0_i32 = arith.constant 0 : i32
    %c0_i32_0 = arith.constant 0 : i32
    %c0_i32_1 = arith.constant 0 : i32
    %c0_i32_2 = arith.constant 0 : i32
    return %c0_i32, %c0_i32_0, %c0_i32_1 : i32, i32, i32
  }
  func.func @transform_9(%arg0: i32) -> (i32, i32) {
    %c0_i32 = arith.constant 0 : i32
    %c0_i32_0 = arith.constant 0 : i32
    %c0_i32_1 = arith.constant 0 : i32
    return %c0_i32, %c0_i32_0 : i32, i32
  }
  func.func @transform_10(%arg0: i32) -> (i32, i32) {
    %c0_i32 = arith.constant 0 : i32
    %c0_i32_0 = arith.constant 0 : i32
    %c0_i32_1 = arith.constant 0 : i32
    return %c0_i32, %c0_i32_0 : i32, i32
  }
  func.func @transform_11(%arg0: i32) -> (i32, i32) {
    %c0_i32 = arith.constant 0 : i32
    %c0_i32_0 = arith.constant 0 : i32
    %c0_i32_1 = arith.constant 0 : i32
    return %c0_i32, %c0_i32_0 : i32, i32
  }
  func.func @transform_12(%arg0: i32) -> (i32, i32, i32, i32) {
    %c0_i32 = arith.constant 0 : i32
    %c0_i32_0 = arith.constant 0 : i32
    %c0_i32_1 = arith.constant 0 : i32
    %c0_i32_2 = arith.constant 0 : i32
    return %arg0, %c0_i32, %c0_i32_0, %c0_i32_1 : i32, i32, i32, i32
  }
}

</mosaic_0001>

<bundles_post_ra>
// kernel: tpu_custom_call.1
= control target key start
LH: loop header
LB: loop body
LE: loop exit
PB: predicated region body
PF: predicated region fallthrough
CT: control target
= control target key end

     0   :  { %s6656_s0 = inlined_call_operand.vmem [shape: f32[2,12,16,4], index: 0, kind: input, shape index: {}]   ;;  %s6657_s1 = inlined_call_operand.vmem [shape: f32[3,4,32], index: 1, kind: input, shape index: {}]   ;;  %s6658_s2 = inlined_call_operand.vmem [shape: f32[1,32], index: 2, kind: input, shape index: {}]   ;;  %s6659_s3 = inlined_call_operand.vmem [shape: f32[160,160], index: 3, kind: input, shape index: {}]   ;;  %s6660_s4 = inlined_call_operand.vmem [shape: f32[16,8], index: 4, kind: input, shape index: {}]   ;;  %s6661_s5 = inlined_call_operand.vmem [shape: f32[1,8], index: 5, kind: input, shape index: {}]   ;;  %s6662_s6 = inlined_call_operand.vmem [shape: f32[3,8,8], index: 6, kind: input, shape index: {}]   ;;  %s6663_s7 = inlined_call_operand.vmem [shape: f32[1,8], index: 7, kind: input, shape index: {}]   ;;  %s6664_s8 = inlined_call_operand.vmem [shape: f32[3,8,32], index: 8, kind: input, shape index: {}]   ;;  %s6665_s9 = inlined_call_operand.vmem [shape: f32[1,32], index: 9, kind: input, shape index: {}]   ;;  %s6666_s10 = inlined_call_operand.vmem [shape: f32[16,16], index: 10, kind: input, shape index: {}]   ;;  %s6667_s11 = inlined_call_operand.vmem [shape: f32[16,16], index: 11, kind: input, shape index: {}]   ;;  %s6668_s12 = inlined_call_operand.hbm [shape: f32[2,8,16,16], index: 12, kind: output, shape index: {}]  }
   0x1   :  { %6687 = sst [smem:[#allocation21_spill]] %s6656_s0 }
   0x2   :  { %17 = vsyncpa [#allocation3], 0 }
   0x3   :  { %19 = vsyncpa [#allocation3 + $0x1], 0  ;;  %s5218_s21 = smov 0   ;;  %s5220_s22 = smov 0  }
   0x4   :  { %s5222_s23 = smov 0   ;;  %s5224_s24 = smov 0  }
   0x5 LB: > { %s5239_s25 = sadd.s32 4294967295, %s5146_s24   ;;  %s3892_s26 = sadd.s32 4294967294, %s5146_s24   ;;  %s5146_s24 = sphi %s5224_s24, %s6727_s24   ;;  %s5142_s23 = sphi %s5222_s23, %s6726_s23   ;;  %s5138_s22 = sphi %s5220_s22, %s6725_s22   ;;  %s5134_s21 = sphi %s5218_s21, %s6724_s21  }
   0x6   : > { %s5243_s27 = sadd.s32 1, %s5146_s24   ;;  %s289_s28 = sadd.s32 1, %s5142_s23 }
   0x7   : > { %s286_s29 = ssub.s32 %s5146_s24, %s5243_s27  ;;  %p299_p0 = scmp.ne.s32.totalorder %s5142_s23, %s5138_s22 }
   0x8   : > { %p287_p1 = scmp.eq.s32.totalorder %s286_s29, 0  ;;  %p300_p2 = scmp.eq.s32.totalorder %s5239_s25, 1 }
   0x9   : > { %p305_p3 = scmp.ne.s32.totalorder %s5138_s22, %s5134_s21  ;;  %p306_p4 = scmp.eq.s32.totalorder %s3892_s26, 1 }
   0xa   : > { %s5254_s30 = scalar_select %p287_p1, %s5142_s23, %s289_s28  }
   0xb   : > { %p5256_p5 = por %p300_p2, %p299_p0  ;;  %p5260_p6 = por %p306_p4, %p305_p3 }
   0xc   : > { %p3895_p7 = scmp.ge.s32.totalorder %s5146_s24, 1  ;;  %p365_p8 = scmp.lt.s32.totalorder %s5146_s24, 3 }
   0xe   : > { %p366_p9 = pnand %p3895_p7, %p365_p8 }
  0x10   : > { %369 = sbr.rel (%p366_p9) target bundleno = 2284 (0x8ec), region = 68 }
  0x17   : > { %v3898_v0 = vld [vmem:[%s6657_s1 + $0x4] sm:$0xf]  ;;  %vm500_vm0 = vcmask 1043456   ;;  %p407_p10 = scmp.lt.s32.totalorder %s5239_s25, 1  ;;  %v436_v1 = vld [vmem:[%s6657_s1] sm:$0xf] }
  0x18   : > { %4380 = vmatprep.subr.msk.mxu0 %vm500_vm0, %v3898_v0  ;;  %vm439_vm1 = vcmask 31744   ;;  %s6690_s0 = sld [smem:[#allocation21_spill]]  ;;  %v3941_v5 = vld [vmem:[%s6657_s1 + $0x8] sm:$0xf]  ;;  %v5380_v27 = vld [vmem:[%s6658_s2] ss:$0 sm:$0xff] }
  0x19   : > { %4381 = vmatpush3.msk.msra.mxu0 %vm500_vm0, %v3898_v0  ;;  %s408_s19 = scalar_select %p407_p10, %s5239_s25, 1  ;;  %v1286_v58 = vld [vmem:[%s6660_s4] sm:$0xff]  ;;  %v1287_v59 = vld [vmem:[%s6660_s4 + $0x8] sm:$0xff]  ;;  %vm1295_vm2 = vcmask 130048   ;;  %vm1562_vm3 = vcmask 261120   ;;  %vm1790_vm4 = vcmask 64512  }
  0x1a   : > { %4412 = vmatprep.subr.msk.mxu0 %vm500_vm0, %v436_v1  ;;  %v4684_v62 = vpack.c.bf16 %v1287_v59, %v1286_v58  ;;  %s5150_s17 = smov [#allocation2]  }
  0x1b   : > { %s4880_s20 = smul.u32 192, %s408_s19  ;;  %s4180_s19 = sshll.u32 %s5239_s25, 11 }
  0x1c   : > { %4685 = vmatprep.subr.bf16.mxu1 %v4684_v62  ;;  %s6603_s15 = scalar_lea.hbm %s6668_s12, %s4180_s19  ;;  %s5088_s19 = sshll.u32 %s5150_s17, 4  ;;  %s5089_s19 = int_to_ptr.vmem [resolvable:$false] %s5088_s19 }
  0x1d   : > { %4687 = vmatpush3.bf16.msra.mxu1 %v4684_v62 }
  0x1e   : > { %s5280_s29 = scalar_lea.vmem %s6690_s0, %s4880_s20 }
  0x1f   : > { %v414_v2 = vld [vmem:[%s5280_s29 + $0x10] sm:$0xff]  ;;  %v415_v3 = vld [vmem:[%s5280_s29 + $0x18] sm:$0xff]  ;;  %v5285_v4 = vld [vmem:[%s5280_s29 + $0x20] sm:$0xff] }
  0x20   : > { %4382 = vmatprep.mubr.msk.f32.mxu0 %vm439_vm1, %v414_v2  ;;  %v417_v6 = vld [vmem:[%s5280_s29 + $0x28] sm:$0xff]  ;;  %v418_v7 = vld [vmem:[%s5280_s29 + $0x30] sm:$0xff]  ;;  %v419_v8 = vld [vmem:[%s5280_s29 + $0x38] sm:$0xff] }
  0x21   : > { %4383 = vmatmul.mubr.msk.f32.vlgmr.msra.gmra.mrb[0].mxu0 %vm439_vm1, %v415_v3  ;;  %v420_v9 = vld [vmem:[%s5280_s29 + $0x40] sm:$0xff]  ;;  %v421_v10 = vld [vmem:[%s5280_s29 + $0x48] sm:$0xff]  ;;  %v422_v11 = vld [vmem:[%s5280_s29 + $0x50] sm:$0xff] }
  0x22   : > { %4385 = vmatprep.mubr.msk.f32.mxu0 %vm439_vm1, %v5285_v4  ;;  %4413 = vmatpush3.msk.msra.mxu0 %vm500_vm0, %v436_v1  ;;  %v423_v12 = vld [vmem:[%s5280_s29 + $0x58] sm:$0xff]  ;;  %v424_v13 = vld [vmem:[%s5280_s29 + $0x60] sm:$0xff]  ;;  %v425_v14 = vld [vmem:[%s5280_s29 + $0x68] sm:$0xff] }
  0x23   : > { %4444 = vmatprep.subr.msk.mxu0 %vm500_vm0, %v3941_v5  ;;  %v426_v15 = vld [vmem:[%s5280_s29 + $0x70] sm:$0xff]  ;;  %v427_v16 = vld [vmem:[%s5280_s29 + $0x78] sm:$0xff]  ;;  %v428_v17 = vld [vmem:[%s5280_s29 + $0x80] sm:$0xff] }
  0x24   : > { %v429_v18 = vld [vmem:[%s5280_s29 + $0x88] sm:$0xff]  ;;  %v430_v19 = vld [vmem:[%s5280_s29 + $0x90] sm:$0xff]  ;;  %v431_v20 = vld [vmem:[%s5280_s29 + $0x98] sm:$0xff] }
  0x25   : > { %4386 = vmatmul.mubr.msk.f32.gmra.mrb[2].mxu0 %vm439_vm1, %v417_v6  ;;  %v432_v21 = vld [vmem:[%s5280_s29 + $0xa0] sm:$0xff]  ;;  %v433_v22 = vld [vmem:[%s5280_s29 + $0xa8] sm:$0xff]  ;;  %v434_v25 = vld [vmem:[%s5280_s29 + $0xb0] sm:$0xff] }
  0x26   : > { %4388 = vmatprep.mubr.msk.f32.mxu0 %vm439_vm1, %v418_v7  ;;  %v412_v23 = vld [vmem:[%s5280_s29] sm:$0xff]  ;;  %v413_v24 = vld [vmem:[%s5280_s29 + $0x8] sm:$0xff]  ;;  %v435_v26 = vld [vmem:[%s5280_s29 + $0xb8] sm:$0xff]  ;;  %s5148_s29 = smov 112  }
  0x29   : > { %4389 = vmatmul.mubr.msk.f32.gmra.mrb[4].mxu0 %vm439_vm1, %v419_v8 }
  0x2a   : > { %4391 = vmatprep.mubr.msk.f32.mxu0 %vm439_vm1, %v420_v9 }
  0x2d   : > { %4392 = vmatmul.mubr.msk.f32.gmra.mrb[6].mxu0 %vm439_vm1, %v421_v10 }
  0x2e   : > { %4394 = vmatprep.mubr.msk.f32.mxu0 %vm439_vm1, %v422_v11 }
  0x31   : > { %4395 = vmatmul.mubr.msk.f32.gmra.mrb[8].mxu0 %vm439_vm1, %v423_v12 }
  0x32   : > { %4397 = vmatprep.mubr.msk.f32.mxu0 %vm439_vm1, %v424_v13 }
  0x35   : > { %4398 = vmatmul.mubr.msk.f32.gmra.mrb[10].mxu0 %vm439_vm1, %v425_v14 }
  0x36   : > { %4400 = vmatprep.mubr.msk.f32.mxu0 %vm439_vm1, %v426_v15 }
  0x39   : > { %4401 = vmatmul.mubr.msk.f32.gmra.mrb[12].mxu0 %vm439_vm1, %v427_v16 }
  0x3a   : > { %4403 = vmatprep.mubr.msk.f32.mxu0 %vm439_vm1, %v428_v17 }
  0x3d   : > { %4404 = vmatmul.mubr.msk.f32.gmra.mrb[14].mxu0 %vm439_vm1, %v429_v18 }
  0x3e   : > { %4406 = vmatprep.mubr.msk.f32.mxu0 %vm439_vm1, %v430_v19 }
  0x41   : > { %4407 = vmatmul.mubr.msk.f32.gmra.mrb[16].mxu0 %vm439_vm1, %v431_v20 }
  0x42   : > { %4409 = vmatprep.mubr.msk.f32.mxu0 %vm439_vm1, %v432_v21 }
  0x45   : > { %4410 = vmatmul.mubr.msk.f32.gmra.mrb[18].mxu0 %vm439_vm1, %v433_v22 }
  0x46   : > { %4414 = vmatprep.mubr.msk.f32.mxu0 %vm439_vm1, %v412_v23 }
  0x49   : > { %4415 = vmatmul.mubr.msk.f32.vlgmr.msra.gmra.mrb[0].mxu0 %vm439_vm1, %v413_v24 }
  0x4a   : > { %4417 = vmatprep.mubr.msk.f32.mxu0 %vm439_vm1, %v414_v2  ;;  %4445 = vmatpush3.msk.msra.mxu0 %vm500_vm0, %v3941_v5 }
  0x4d   : > { %4418 = vmatmul.mubr.msk.f32.gmra.mrb[2].mxu0 %vm439_vm1, %v415_v3 }
  0x4e   : > { %4420 = vmatprep.mubr.msk.f32.mxu0 %vm439_vm1, %v5285_v4 }
  0x51   : > { %4421 = vmatmul.mubr.msk.f32.gmra.mrb[4].mxu0 %vm439_vm1, %v417_v6 }
  0x52   : > { %4423 = vmatprep.mubr.msk.f32.mxu0 %vm439_vm1, %v418_v7 }
  0x55   : > { %4424 = vmatmul.mubr.msk.f32.gmra.mrb[6].mxu0 %vm439_vm1, %v419_v8 }
  0x56   : > { %4426 = vmatprep.mubr.msk.f32.mxu0 %vm439_vm1, %v420_v9 }
  0x59   : > { %4427 = vmatmul.mubr.msk.f32.gmra.mrb[8].mxu0 %vm439_vm1, %v421_v10 }
  0x5a   : > { %4429 = vmatprep.mubr.msk.f32.mxu0 %vm439_vm1, %v422_v11 }
  0x5d   : > { %4430 = vmatmul.mubr.msk.f32.gmra.mrb[10].mxu0 %vm439_vm1, %v423_v12 }
  0x5e   : > { %4432 = vmatprep.mubr.msk.f32.mxu0 %vm439_vm1, %v424_v13 }
  0x61   : > { %4433 = vmatmul.mubr.msk.f32.gmra.mrb[12].mxu0 %vm439_vm1, %v425_v14 }
  0x62   : > { %4435 = vmatprep.mubr.msk.f32.mxu0 %vm439_vm1, %v426_v15 }
  0x65   : > { %4436 = vmatmul.mubr.msk.f32.gmra.mrb[14].mxu0 %vm439_vm1, %v427_v16 }
  0x66   : > { %4438 = vmatprep.mubr.msk.f32.mxu0 %vm439_vm1, %v428_v17 }
  0x69   : > { %4439 = vmatmul.mubr.msk.f32.gmra.mrb[16].mxu0 %vm439_vm1, %v429_v18 }
  0x6a   : > { %4441 = vmatprep.mubr.msk.f32.mxu0 %vm439_vm1, %v430_v19 }
  0x6d   : > { %4442 = vmatmul.mubr.msk.f32.gmra.mrb[18].mxu0 %vm439_vm1, %v431_v20 }
  0x6e   : > { %4446 = vmatprep.mubr.msk.f32.mxu0 %vm439_vm1, %v5285_v4 }
  0x71   : > { %4447 = vmatmul.mubr.msk.f32.vlgmr.msra.gmra.mrb[0].mxu0 %vm439_vm1, %v417_v6 }
  0x72   : > { %4449 = vmatprep.mubr.msk.f32.mxu0 %vm439_vm1, %v418_v7 }
  0x75   : > { %4450 = vmatmul.mubr.msk.f32.gmra.mrb[2].mxu0 %vm439_vm1, %v419_v8 }
  0x76   : > { %4452 = vmatprep.mubr.msk.f32.mxu0 %vm439_vm1, %v420_v9 }
  0x79   : > { %4453 = vmatmul.mubr.msk.f32.gmra.mrb[4].mxu0 %vm439_vm1, %v421_v10 }
  0x7a   : > { %4455 = vmatprep.mubr.msk.f32.mxu0 %vm439_vm1, %v422_v11 }
  0x7d   : > { %4456 = vmatmul.mubr.msk.f32.gmra.mrb[6].mxu0 %vm439_vm1, %v423_v12 }
  0x7e   : > { %4458 = vmatprep.mubr.msk.f32.mxu0 %vm439_vm1, %v424_v13 }
  0x81   : > { %4459 = vmatmul.mubr.msk.f32.gmra.mrb[8].mxu0 %vm439_vm1, %v425_v14 }
  0x82   : > { %4461 = vmatprep.mubr.msk.f32.mxu0 %vm439_vm1, %v426_v15 }
  0x85   : > { %4462 = vmatmul.mubr.msk.f32.gmra.mrb[10].mxu0 %vm439_vm1, %v427_v16 }
  0x86   : > { %4464 = vmatprep.mubr.msk.f32.mxu0 %vm439_vm1, %v428_v17 }
  0x89   : > { %4465 = vmatmul.mubr.msk.f32.gmra.mrb[12].mxu0 %vm439_vm1, %v429_v18 }
  0x8a   : > { %4467 = vmatprep.mubr.msk.f32.mxu0 %vm439_vm1, %v430_v19 }
  0x8d   : > { %4468 = vmatmul.mubr.msk.f32.gmra.mrb[14].mxu0 %vm439_vm1, %v431_v20 }
  0x8e   : > { %4470 = vmatprep.mubr.msk.f32.mxu0 %vm439_vm1, %v432_v21 }
  0x91   : > { %4471 = vmatmul.mubr.msk.f32.gmra.mrb[16].mxu0 %vm439_vm1, %v433_v22 }
  0x92   : > { %4473 = vmatprep.mubr.msk.f32.mxu0 %vm439_vm1, %v434_v25 }
  0x95   : > { %4474 = vmatmul.mubr.msk.f32.gmra.mrb[18].mxu0 %vm439_vm1, %v435_v26 }
 0x144   : > { %v4448_v28 = vpop.f32.mrb[0].mxu0 }
 0x145   : > { %v5383_v29 = vadd.f32 %v4448_v28, %v5380_v27  ;;  %v920_v30 = vpop.f32.mrb[1].mxu0 }
 0x146   : > { %v5386_v31 = vadd.f32 %v5380_v27, %v920_v30 }
 0x147   : > { %v3965_v32 = vmul.f32 -1.442695, %v5383_v29 }
 0x148   : > { %v3964_v33 = vmul.f32 -1.442695, %v5386_v31  ;;  %v4451_v34 = vpop.f32.mrb[2].mxu0 }
 0x149   : > { %4924 = vpow2.f32 %v3965_v32  ;;  %v5391_v35 = vadd.f32 %v4451_v34, %v5380_v27  ;;  %v930_v36 = vpop.f32.mrb[3].mxu0 }
 0x14a   : > { %4926 = vpow2.f32 %v3964_v33  ;;  %v5394_v37 = vadd.f32 %v5380_v27, %v930_v36 }
 0x14b   : > { %v3967_v38 = vmul.f32 -1.442695, %v5391_v35 }
 0x14c   : > { %v3966_v39 = vmul.f32 -1.442695, %v5394_v37  ;;  %v4454_v40 = vpop.f32.mrb[4].mxu0 }
 0x14d   : > { %4928 = vpow2.f32 %v3967_v38  ;;  %v5399_v41 = vadd.f32 %v4454_v40, %v5380_v27  ;;  %v940_v42 = vpop.f32.mrb[5].mxu0 }
 0x14e   : > { %4930 = vpow2.f32 %v3966_v39  ;;  %v5402_v43 = vadd.f32 %v5380_v27, %v940_v42 }
 0x14f   : > { %v3969_v44 = vmul.f32 -1.442695, %v5399_v41 }
 0x150   : > { %v3968_v45 = vmul.f32 -1.442695, %v5402_v43  ;;  %v4457_v46 = vpop.f32.mrb[6].mxu0 }
 0x151   : > { %4932 = vpow2.f32 %v3969_v44  ;;  %v5407_v47 = vadd.f32 %v4457_v46, %v5380_v27  ;;  %v950_v48 = vpop.f32.mrb[7].mxu0 }
 0x152   : > { %4934 = vpow2.f32 %v3968_v45  ;;  %v5410_v49 = vadd.f32 %v5380_v27, %v950_v48 }
 0x153   : > { %v4925_v50 = vpop.eup %4924  ;;  %v3971_v51 = vmul.f32 -1.442695, %v5407_v47 }
 0x154   : > { %v4927_v52 = vpop.eup %4926  ;;  %v3970_v53 = vmul.f32 -1.442695, %v5410_v49  ;;  %v4460_v54 = vpop.f32.mrb[8].mxu0  ;;  %v1127_v60 = vadd.f32 1.0, %v4925_v50 }
 0x155   : > { %v1126_v55 = vadd.f32 1.0, %v4927_v52  ;;  %4936 = vpow2.f32 %v3971_v51  ;;  %v5415_v56 = vadd.f32 %v4460_v54, %v5380_v27  ;;  %v960_v57 = vpop.f32.mrb[9].mxu0 }
 0x156   : > { %v5424_v61 = vadd.f32 %v5380_v27, %v960_v57 }
 0x157   : > { %v4929_v63 = vpop.eup %4928  ;;  %4938 = vrcp.f32 %v1126_v55  ;;  %v3973_v0 = vmul.f32 -1.442695, %v5415_v56 }
 0x158   : > { %v4931_v1 = vpop.eup %4930  ;;  %4940 = vpow2.f32 %v3970_v53  ;;  %v3972_v2 = vmul.f32 -1.442695, %v5424_v61  ;;  %v4463_v3 = vpop.f32.mrb[10].mxu0  ;;  %v1129_v7 = vadd.f32 1.0, %v4929_v63 }
 0x159   : > { %v1128_v4 = vadd.f32 1.0, %v4931_v1  ;;  %4942 = vpow2.f32 %v3973_v0  ;;  %v5429_v5 = vadd.f32 %v4463_v3, %v5380_v27  ;;  %v970_v6 = vpop.f32.mrb[11].mxu0 }
 0x15a   : > { %4944 = vrcp.f32 %v1127_v60  ;;  %v5432_v8 = vadd.f32 %v5380_v27, %v970_v6 }
 0x15b   : > { %v4933_v9 = vpop.eup %4932  ;;  %4946 = vrcp.f32 %v1128_v4  ;;  %v3975_v10 = vmul.f32 -1.442695, %v5429_v5 }
 0x15c   : > { %v4935_v11 = vpop.eup %4934  ;;  %4948 = vpow2.f32 %v3972_v2  ;;  %v3974_v12 = vmul.f32 -1.442695, %v5432_v8  ;;  %v4466_v13 = vpop.f32.mrb[12].mxu0  ;;  %v1131_v14 = vadd.f32 1.0, %v4933_v9 }
 0x15d   : > { %v1130_v15 = vadd.f32 1.0, %v4935_v11  ;;  %4950 = vpow2.f32 %v3975_v10  ;;  %v5437_v16 = vadd.f32 %v4466_v13, %v5380_v27  ;;  %v980_v17 = vpop.f32.mrb[13].mxu0 }
 0x15e   : > { %4952 = vrcp.f32 %v1129_v7  ;;  %v5440_v18 = vadd.f32 %v5380_v27, %v980_v17 }
 0x15f   : > { %v4937_v19 = vpop.eup %4936  ;;  %4954 = vrcp.f32 %v1130_v15  ;;  %v3977_v20 = vmul.f32 -1.442695, %v5437_v16 }
 0x160   : > { %4956 = vpow2.f32 %v3974_v12  ;;  %v3976_v21 = vmul.f32 -1.442695, %v5440_v18  ;;  %v4469_v22 = vpop.f32.mrb[14].mxu0  ;;  %v1133_v28 = vadd.f32 1.0, %v4937_v19 }
 0x161   : > { %v4939_v23 = vpop.eup %4938  ;;  %4958 = vrcp.f32 %v1131_v14  ;;  %v5445_v24 = vadd.f32 %v4469_v22, %v5380_v27  ;;  %v990_v25 = vpop.f32.mrb[15].mxu0 }
 0x162   : > { %v4941_v26 = vpop.eup %4940  ;;  %4960 = vpow2.f32 %v3977_v20  ;;  %v5448_v30 = vadd.f32 %v5380_v27, %v990_v25  ;;  %1206 = vrot.lane.b32.xlu0 %v4939_v23, %s5148_s29 }
 0x163   : > { %v4943_v32 = vpop.eup %4942  ;;  %v1132_v33 = vadd.f32 1.0, %v4941_v26  ;;  %4962 = vpow2.f32 %v3976_v21  ;;  %v3979_v34 = vmul.f32 -1.442695, %v5445_v24 }
 0x164   : > { %v4945_v36 = vpop.eup %4944  ;;  %v3978_v38 = vmul.f32 -1.442695, %v5448_v30  ;;  %v4472_v39 = vpop.f32.mrb[16].mxu0  ;;  %v1135_v46 = vadd.f32 1.0, %v4943_v32 }
 0x165   : > { %v4947_v40 = vpop.eup %4946  ;;  %4964 = vrcp.f32 %v1132_v33  ;;  %v5454_v42 = vadd.f32 %v4472_v39, %v5380_v27  ;;  %v1000_v44 = vpop.f32.mrb[17].mxu0 }
 0x166   : > { %v4949_v45 = vpop.eup %4948  ;;  %4966 = vrcp.f32 %v1133_v28  ;;  %v5457_v48 = vadd.f32 %v5380_v27, %v1000_v44  ;;  %1208 = vrot.lane.b32.xlu0 %v4945_v36, %s5148_s29  ;;  %1210 = vrot.lane.b32.xlu1 %v4947_v40, %s5148_s29 }
 0x167   : > { %v4951_v50 = vpop.eup %4950  ;;  %v1134_v51 = vadd.f32 1.0, %v4949_v45  ;;  %4968 = vpow2.f32 %v3979_v34  ;;  %v3981_v52 = vmul.f32 -1.442695, %v5454_v42 }
 0x168   : > { %v4953_v53 = vpop.eup %4952  ;;  %4970 = vpow2.f32 %v3978_v38  ;;  %v3980_v54 = vmul.f32 -1.442695, %v5457_v48  ;;  %v4475_v55 = vpop.f32.mrb[18].mxu0  ;;  %v1137_v62 = vadd.f32 1.0, %v4951_v50 }
 0x169   : > { %v4955_v57 = vpop.eup %4954  ;;  %4972 = vrcp.f32 %v1134_v51  ;;  %v5464_v58 = vadd.f32 %v4475_v55, %v5380_v27  ;;  %v1010_v59 = vpop.f32.mrb[19].mxu0 }
 0x16a   : > { %v4957_v60 = vpop.eup %4956  ;;  %4974 = vrcp.f32 %v1135_v46  ;;  %v5467_v63 = vadd.f32 %v5380_v27, %v1010_v59  ;;  %1212 = vrot.lane.b32.xlu1 %v4953_v53, %s5148_s29  ;;  %1214 = vrot.lane.b32.xlu0 %v4955_v57, %s5148_s29 }
 0x16b   : > { %v4959_v0 = vpop.eup %4958  ;;  %v1136_v1 = vadd.f32 1.0, %v4957_v60  ;;  %4976 = vpow2.f32 %v3981_v52  ;;  %v3983_v2 = vmul.f32 -1.442695, %v5464_v58 }
 0x16c   : > { %v4961_v3 = vpop.eup %4960  ;;  %4978 = vpow2.f32 %v3980_v54  ;;  %v3982_v6 = vmul.f32 -1.442695, %v5467_v63 }
 0x16d   : > { %v4963_v4 = vpop.eup %4962  ;;  %4980 = vrcp.f32 %v1136_v1  ;;  %v1139_v9 = vadd.f32 1.0, %v4961_v3 }
 0x16e   : > { %4982 = vrcp.f32 %v1137_v62  ;;  %v1138_v7 = vadd.f32 1.0, %v4963_v4  ;;  %1216 = vrot.lane.b32.xlu1 %v4959_v0, %s5148_s29 }
 0x16f   : > { %v4965_v27 = vpop.eup %4964  ;;  %4984 = vpow2.f32 %v3983_v2 }
 0x170   : > { %v4967_v10 = vpop.eup %4966  ;;  %4986 = vrcp.f32 %v1138_v7  ;;  %1218 = vrot.lane.b32.xlu0 %v4965_v27, %s5148_s29 }
 0x171   : > { %v4969_v11 = vpop.eup %4968  ;;  %4988 = vpow2.f32 %v3982_v6 }
 0x172   : > { %v4971_v12 = vpop.eup %4970  ;;  %1220 = vrot.lane.b32.xlu1 %v4967_v10, %s5148_s29  ;;  %4990 = vrcp.f32 %v1139_v9  ;;  %v1141_v14 = vadd.f32 1.0, %v4969_v11 }
 0x173   : > { %v4973_v13 = vpop.eup %4972  ;;  %v1140_v15 = vadd.f32 1.0, %v4971_v12 }
 0x174   : > { %v4975_v17 = vpop.eup %4974  ;;  %1222 = vrot.lane.b32.xlu0 %v4973_v13, %s5148_s29 }
 0x175   : > { %v4977_v19 = vpop.eup %4976  ;;  %4992 = vrcp.f32 %v1140_v15 }
 0x176   : > { %v4979_v20 = vpop.eup %4978  ;;  %1224 = vrot.lane.b32.xlu1 %v4975_v17, %s5148_s29  ;;  %4994 = vrcp.f32 %v1141_v14  ;;  %v1143_v22 = vadd.f32 1.0, %v4977_v19 }
 0x177   : > { %v4981_v21 = vpop.eup %4980  ;;  %v1142_v23 = vadd.f32 1.0, %v4979_v20 }
 0x178   : > { %v4983_v25 = vpop.eup %4982  ;;  %1226 = vrot.lane.b32.xlu0 %v4981_v21, %s5148_s29 }
 0x179   : > { %v4985_v26 = vpop.eup %4984  ;;  %4996 = vrcp.f32 %v1142_v23 }
 0x17a   : > { %v4987_v28 = vpop.eup %4986  ;;  %1228 = vrot.lane.b32.xlu1 %v4983_v25, %s5148_s29  ;;  %4998 = vrcp.f32 %v1143_v22  ;;  %v1145_v33 = vadd.f32 1.0, %v4985_v26 }
 0x17b   : > { %v4989_v32 = vpop.eup %4988 }
 0x17c   : > { %v1144_v34 = vadd.f32 1.0, %v4989_v32  ;;  %1230 = vrot.lane.b32.xlu0 %v4987_v28, %s5148_s29  ;;  %v4991_v36 = vpop.eup %4990 }
 0x17e   : > { %5000 = vrcp.f32 %v1144_v34  ;;  %1232 = vrot.lane.b32.xlu1 %v4991_v36, %s5148_s29 }
 0x17f   : > { %v4993_v38 = vpop.eup %4992  ;;  %5002 = vrcp.f32 %v1145_v33 }
 0x180   : > { %1234 = vrot.lane.b32.xlu0 %v4993_v38, %s5148_s29  ;;  %v4995_v39 = vpop.eup %4994 }
 0x182   : > { %1236 = vrot.lane.b32.xlu1 %v4995_v39, %s5148_s29 }
 0x183   : > { %v4997_v40 = vpop.eup %4996 }
 0x184   : > { %1238 = vrot.lane.b32.xlu0 %v4997_v40, %s5148_s29  ;;  %v4999_v44 = vpop.eup %4998 }
 0x186   : > { %1240 = vrot.lane.b32.xlu1 %v4999_v44, %s5148_s29 }
 0x188   : > { %v5001_v45 = vpop.eup %5000 }
 0x189   : > { %v5003_v46 = vpop.eup %5002  ;;  %1242 = vrot.lane.b32.xlu0 %v5001_v45, %s5148_s29 }
 0x18a   : > { %1244 = vrot.lane.b32.xlu1 %v5003_v46, %s5148_s29 }
 0x1d4   : > { %v1207_v50 = vpop.permute.xlu0 %1206 }
 0x1d5   : > { %v1266_v51 = vmul.f32 %v1207_v50, %v5386_v31 }
 0x1d7   : > { %4480 = vmatprep.mubr.msk.f32.mxu1 %vm1295_vm2, %v1266_v51 }
 0x1d8   : > { %v1209_v52 = vpop.permute.xlu0 %1208  ;;  %v1211_v53 = vpop.permute.xlu1 %1210 }
 0x1d9   : > { %v1267_v54 = vmul.f32 %v1209_v52, %v5383_v29  ;;  %v1268_v55 = vmul.f32 %v1211_v53, %v5394_v37 }
 0x1db   : > { %4481 = vmatmul.mubr.msk.f32.vlgmr.msra.gmra.mrb[0].mxu1 %vm1295_vm2, %v1267_v54 }
 0x1dc   : > { %4483 = vmatprep.mubr.msk.f32.mxu1 %vm1295_vm2, %v1268_v55  ;;  %v1213_v57 = vpop.permute.xlu1 %1212  ;;  %v1215_v59 = vpop.permute.xlu0 %1214 }
 0x1dd   : > { %v1269_v60 = vmul.f32 %v1213_v57, %v5391_v35  ;;  %v1270_v62 = vmul.f32 %v1215_v59, %v5402_v43 }
 0x1df   : > { %4484 = vmatmul.mubr.msk.f32.gmra.mrb[2].mxu1 %vm1295_vm2, %v1269_v60 }
 0x1e0   : > { %v1217_v31 = vpop.permute.xlu1 %1216  ;;  %4486 = vmatprep.mubr.msk.f32.mxu1 %vm1295_vm2, %v1270_v62 }
 0x1e1   : > { %v1271_v0 = vmul.f32 %v1217_v31, %v5399_v41 }
 0x1e2   : > { %v1219_v29 = vpop.permute.xlu0 %1218 }
 0x1e3   : > { %v1272_v37 = vmul.f32 %v1219_v29, %v5410_v49  ;;  %4487 = vmatmul.mubr.msk.f32.gmra.mrb[4].mxu1 %vm1295_vm2, %v1271_v0 }
 0x1e4   : > { %v1221_v1 = vpop.permute.xlu1 %1220 }
 0x1e5   : > { %v1273_v2 = vmul.f32 %v1221_v1, %v5407_v47  ;;  %4489 = vmatprep.mubr.msk.f32.mxu1 %vm1295_vm2, %v1272_v37 }
 0x1e6   : > { %v1223_v35 = vpop.permute.xlu0 %1222 }
 0x1e7   : > { %v1274_v43 = vmul.f32 %v1223_v35, %v5424_v61  ;;  %4490 = vmatmul.mubr.msk.f32.gmra.mrb[6].mxu1 %vm1295_vm2, %v1273_v2 }
 0x1e8   : > { %v1225_v3 = vpop.permute.xlu1 %1224 }
 0x1e9   : > { %v1275_v4 = vmul.f32 %v1225_v3, %v5415_v56  ;;  %4492 = vmatprep.mubr.msk.f32.mxu1 %vm1295_vm2, %v1274_v43 }
 0x1ea   : > { %v1227_v41 = vpop.permute.xlu0 %1226 }
 0x1eb   : > { %v1276_v49 = vmul.f32 %v1227_v41, %v5432_v8  ;;  %4493 = vmatmul.mubr.msk.f32.gmra.mrb[8].mxu1 %vm1295_vm2, %v1275_v4 }
 0x1ec   : > { %v1229_v6 = vpop.permute.xlu1 %1228 }
 0x1ed   : > { %v1277_v47 = vmul.f32 %v1229_v6, %v5429_v5  ;;  %4495 = vmatprep.mubr.msk.f32.mxu1 %vm1295_vm2, %v1276_v49 }
 0x1ee   : > { %v1231_v7 = vpop.permute.xlu0 %1230 }
 0x1ef   : > { %v1278_v61 = vmul.f32 %v1231_v7, %v5440_v18  ;;  %4496 = vmatmul.mubr.msk.f32.gmra.mrb[10].mxu1 %vm1295_vm2, %v1277_v47 }
 0x1f0   : > { %v1233_v27 = vpop.permute.xlu1 %1232 }
 0x1f1   : > { %v1279_v56 = vmul.f32 %v1233_v27, %v5437_v16  ;;  %4498 = vmatprep.mubr.msk.f32.mxu1 %vm1295_vm2, %v1278_v61 }
 0x1f2   : > { %v1235_v9 = vpop.permute.xlu0 %1234 }
 0x1f3   : > { %v1280_v8 = vmul.f32 %v1235_v9, %v5448_v30  ;;  %4499 = vmatmul.mubr.msk.f32.gmra.mrb[12].mxu1 %vm1295_vm2, %v1279_v56 }
 0x1f4   : > { %v1237_v10 = vpop.permute.xlu1 %1236 }
 0x1f5   : > { %v1281_v5 = vmul.f32 %v1237_v10, %v5445_v24  ;;  %4501 = vmatprep.mubr.msk.f32.mxu1 %vm1295_vm2, %v1280_v8  ;;  %v5650_v10 = vld [vmem:[%s6659_s3] sm:$0xff] }
 0x1f6   : > { %v1239_v11 = vpop.permute.xlu0 %1238 }
 0x1f7   : > { %v1282_v18 = vmul.f32 %v1239_v11, %v5457_v48  ;;  %4502 = vmatmul.mubr.msk.f32.gmra.mrb[14].mxu1 %vm1295_vm2, %v1281_v5  ;;  %v6669_v48 = vmov 0.0|0.0   ;;  %v5655_v5 = vld [vmem:[%s6659_s3 + $0x70] sm:$0xff]  ;;  %v5660_v11 = vld [vmem:[%s6659_s3 + $0x18] sm:$0xff] }
 0x1f8   : > { %v1241_v12 = vpop.permute.xlu1 %1240  ;;  %4688 = vmatprep.subr.bf16.mxu0 %v6669_v48  ;;  %4748 = vmatprep.subr.bf16.mxu1 %v6669_v48 }
 0x1f9   : > { %v1283_v16 = vmul.f32 %v1241_v12, %v5454_v42  ;;  %4504 = vmatprep.mubr.msk.f32.mxu1 %vm1295_vm2, %v1282_v18  ;;  %v5533_v42 = vld [vmem:[%s6659_s3 + $0x8] sm:$0xff]  ;;  %v5677_v12 = vld [vmem:[%s6659_s3 + $0x10] sm:$0xff] }
 0x1fa   : > { %4005 = vmatprep.mubr.msk.f32.mxu0 %vm1562_vm3, %v5533_v42  ;;  %v5665_v18 = vld [vmem:[%s6659_s3 + $0x88] sm:$0xff] }
 0x1fb   : > { %v1243_v13 = vpop.permute.xlu0 %1242  ;;  %4505 = vmatmul.mubr.msk.f32.gmra.mrb[16].mxu1 %vm1295_vm2, %v1283_v16  ;;  %v5682_v16 = vld [vmem:[%s6659_s3 + $0x80] sm:$0xff] }
 0x1fc   : > { %v1284_v30 = vmul.f32 %v1243_v13, %v5467_v63  ;;  %v1245_v14 = vpop.permute.xlu1 %1244  ;;  %v5538_v63 = vld [vmem:[%s6659_s3 + $0x78] sm:$0xff]  ;;  %v5687_v13 = vld [vmem:[%s6659_s3 + $0x28] sm:$0xff] }
 0x1fd   : > { %v1285_v24 = vmul.f32 %v1245_v14, %v5464_v58  ;;  %v5547_v58 = vld [vmem:[%s6661_s5] ss:$0 sm:$0xff] }
 0x1fe   : > { %4507 = vmatprep.mubr.msk.f32.mxu1 %vm1295_vm2, %v1284_v30  ;;  %v5692_v30 = vld [vmem:[%s6659_s3 + $0x98] sm:$0xff]  ;;  %v5703_v14 = vld [vmem:[%s6659_s3 + $0x20] sm:$0xff] }
 0x1ff   : > { %4508 = vmatmul.mubr.msk.f32.gmra.mrb[18].mxu1 %vm1295_vm2, %v1285_v24  ;;  %v5708_v24 = vld [vmem:[%s6659_s3 + $0x90] sm:$0xff] }
 0x200   : > { %4012 = vmatprep.mubr.msk.f32.mxu1 %vm1562_vm3, %v5538_v63 }
 0x2ae   : > { %v4482_v15 = vpop.f32.mrb[0].mxu1 }
 0x2af   : > { %v5550_v17 = vadd.f32 %v4482_v15, %v5547_v58  ;;  %v1422_v19 = vpop.f32.mrb[1].mxu1  ;;  %v5718_v15 = vld [vmem:[%s6659_s3 + $0xa8] sm:$0xff] }
 0x2b0   : > { %v5553_v20 = vadd.f32 %v5547_v58, %v1422_v19  ;;  %v5729_v19 = vld [vmem:[%s6659_s3 + $0x30] sm:$0xff] }
 0x2b2   : > { %v4485_v21 = vpop.f32.mrb[2].mxu1  ;;  %v4689_v22 = vpack.c.bf16 %v5550_v17, %v5553_v20 }
 0x2b3   : > { %v5558_v23 = vadd.f32 %v4485_v21, %v5547_v58  ;;  %v1432_v25 = vpop.f32.mrb[3].mxu1  ;;  %v5734_v21 = vld [vmem:[%s6659_s3 + $0xa0] sm:$0xff] }
 0x2b4   : > { %v5561_v26 = vadd.f32 %v5547_v58, %v1432_v25  ;;  %4690 = vmatpush1.bf16.msra.mxu0 %v4689_v22  ;;  %4758 = vmatpush1.bf16.msra.mxu1 %v4689_v22  ;;  %v5739_v22 = vld [vmem:[%s6659_s3 + $0x48] sm:$0xff]  ;;  %v5744_v25 = vld [vmem:[%s6659_s3 + $0xb8] sm:$0xff] }
 0x2b5   : > { %4691 = vmatprep.subr.bf16.mxu0 %v6669_v48  ;;  %4749 = vmatprep.subr.bf16.mxu1 %v6669_v48 }
 0x2b6   : > { %v4488_v28 = vpop.f32.mrb[4].mxu1  ;;  %v4692_v32 = vpack.c.bf16 %v5558_v23, %v5561_v26 }
 0x2b7   : > { %v5568_v33 = vadd.f32 %v4488_v28, %v5547_v58  ;;  %v1442_v34 = vpop.f32.mrb[5].mxu1  ;;  %v5755_v28 = vld [vmem:[%s6659_s3 + $0x40] sm:$0xff] }
 0x2b8   : > { %v5571_v36 = vadd.f32 %v5547_v58, %v1442_v34  ;;  %4693 = vmatpush1.bf16.msra.mxu0 %v4692_v32  ;;  %4759 = vmatpush1.bf16.msra.mxu1 %v4692_v32  ;;  %v5760_v32 = vld [vmem:[%s6659_s3 + $0xb0] sm:$0xff]  ;;  %v5765_v34 = vld [vmem:[%s6659_s3 + $0x58] sm:$0xff] }
 0x2b9   : > { %4694 = vmatprep.subr.bf16.mxu0 %v6669_v48  ;;  %4750 = vmatprep.subr.bf16.mxu1 %v6669_v48 }
 0x2ba   : > { %v4491_v38 = vpop.f32.mrb[6].mxu1  ;;  %v4695_v39 = vpack.c.bf16 %v5568_v33, %v5571_v36 }
 0x2bb   : > { %v5578_v40 = vadd.f32 %v4491_v38, %v5547_v58  ;;  %v1452_v44 = vpop.f32.mrb[7].mxu1  ;;  %v5770_v38 = vld [vmem:[%s6659_s3 + $0xc8] sm:$0xff] }
 0x2bc   : > { %v5581_v45 = vadd.f32 %v5547_v58, %v1452_v44  ;;  %4696 = vmatpush1.bf16.msra.mxu0 %v4695_v39  ;;  %4760 = vmatpush1.bf16.msra.mxu1 %v4695_v39  ;;  %6691 = vst [vmem:[#allocation5_spill] sm:$0xff] %v5770_v38  ;;  %v5781_v39 = vld [vmem:[%s6659_s3 + $0x50] sm:$0xff]  ;;  %v5786_v44 = vld [vmem:[%s6659_s3 + $0xc0] sm:$0xff] }
 0x2bd   : > { %4697 = vmatprep.subr.bf16.mxu0 %v6669_v48  ;;  %4751 = vmatprep.subr.bf16.mxu1 %v6669_v48  ;;  %6692 = vst [vmem:[#allocation6_spill] sm:$0xff] %v5786_v44 }
 0x2be   : > { %v4494_v46 = vpop.f32.mrb[8].mxu1  ;;  %v4698_v50 = vpack.c.bf16 %v5578_v40, %v5581_v45 }
 0x2bf   : > { %v5588_v51 = vadd.f32 %v4494_v46, %v5547_v58  ;;  %v1462_v52 = vpop.f32.mrb[9].mxu1  ;;  %v5791_v46 = vld [vmem:[%s6659_s3 + $0x68] sm:$0xff] }
 0x2c0   : > { %v5591_v53 = vadd.f32 %v5547_v58, %v1462_v52  ;;  %4699 = vmatpush1.bf16.msra.mxu0 %v4698_v50  ;;  %4761 = vmatpush1.bf16.msra.mxu1 %v4698_v50  ;;  %v5796_v50 = vld [vmem:[%s6659_s3 + $0xd8] sm:$0xff]  ;;  %v5807_v52 = vld [vmem:[%s6659_s3 + $0x60] sm:$0xff] }
 0x2c1   : > { %4700 = vmatprep.subr.bf16.mxu0 %v6669_v48  ;;  %4752 = vmatprep.subr.bf16.mxu1 %v6669_v48  ;;  %6693 = vst [vmem:[#allocation7_spill] sm:$0xff] %v5796_v50 }
 0x2c2   : > { %v4497_v54 = vpop.f32.mrb[10].mxu1  ;;  %v4701_v55 = vpack.c.bf16 %v5588_v51, %v5591_v53 }
 0x2c3   : > { %v5598_v57 = vadd.f32 %v4497_v54, %v5547_v58  ;;  %v1472_v59 = vpop.f32.mrb[11].mxu1  ;;  %v5812_v54 = vld [vmem:[%s6659_s3 + $0xd0] sm:$0xff] }
 0x2c4   : > { %v5601_v60 = vadd.f32 %v5547_v58, %v1472_v59  ;;  %4702 = vmatpush1.bf16.msra.mxu0 %v4701_v55  ;;  %4762 = vmatpush1.bf16.msra.mxu1 %v4701_v55  ;;  %6694 = vst [vmem:[#allocation8_spill] sm:$0xff] %v5812_v54  ;;  %v5817_v55 = vld [vmem:[%s6659_s3 + $0xe8] sm:$0xff]  ;;  %v5826_v59 = vld [vmem:[%s6659_s3 + $0xe0] sm:$0xff] }
 0x2c5   : > { %4703 = vmatprep.subr.bf16.mxu0 %v6669_v48  ;;  %4753 = vmatprep.subr.bf16.mxu1 %v6669_v48  ;;  %6695 = vst [vmem:[#allocation9_spill] sm:$0xff] %v5817_v55  ;;  %6696 = vst [vmem:[#allocation10_spill] sm:$0xff] %v5826_v59 }
 0x2c6   : > { %v4500_v62 = vpop.f32.mrb[12].mxu1  ;;  %v4704_v31 = vpack.c.bf16 %v5598_v57, %v5601_v60 }
 0x2c7   : > { %v5608_v0 = vadd.f32 %v4500_v62, %v5547_v58  ;;  %v1482_v29 = vpop.f32.mrb[13].mxu1  ;;  %v5831_v62 = vld [vmem:[%s6659_s3 + $0xf8] sm:$0xff] }
 0x2c8   : > { %v5611_v37 = vadd.f32 %v5547_v58, %v1482_v29  ;;  %4705 = vmatpush1.bf16.msra.mxu0 %v4704_v31  ;;  %4763 = vmatpush1.bf16.msra.mxu1 %v4704_v31  ;;  %6697 = vst [vmem:[#allocation11_spill] sm:$0xff] %v5831_v62  ;;  %v5839_v31 = vld [vmem:[%s6659_s3 + $0xf0] sm:$0xff]  ;;  %v5844_v29 = vld [vmem:[%s6659_s3 + $0x108] sm:$0xff] }
 0x2c9   : > { %4706 = vmatprep.subr.bf16.mxu0 %v6669_v48  ;;  %4754 = vmatprep.subr.bf16.mxu1 %v6669_v48  ;;  %6698 = vst [vmem:[#allocation12_spill] sm:$0xff] %v5839_v31  ;;  %6699 = vst [vmem:[#allocation13_spill] sm:$0xff] %v5844_v29 }
 0x2ca   : > { %v4503_v1 = vpop.f32.mrb[14].mxu1  ;;  %v4707_v2 = vpack.c.bf16 %v5608_v0, %v5611_v37 }
 0x2cb   : > { %v5618_v35 = vadd.f32 %v4503_v1, %v5547_v58  ;;  %v1492_v43 = vpop.f32.mrb[15].mxu1  ;;  %v5852_v1 = vld [vmem:[%s6659_s3 + $0x100] sm:$0xff] }
 0x2cc   : > { %v5621_v3 = vadd.f32 %v5547_v58, %v1492_v43  ;;  %4708 = vmatpush1.bf16.msra.mxu0 %v4707_v2  ;;  %4764 = vmatpush1.bf16.msra.mxu1 %v4707_v2  ;;  %6700 = vst [vmem:[#allocation14_spill] sm:$0xff] %v5852_v1  ;;  %v5857_v2 = vld [vmem:[%s6659_s3 + $0x118] sm:$0xff]  ;;  %v5865_v43 = vld [vmem:[%s6659_s3 + $0x110] sm:$0xff] }
 0x2cd   : > { %4709 = vmatprep.subr.bf16.mxu0 %v6669_v48  ;;  %4755 = vmatprep.subr.bf16.mxu1 %v6669_v48  ;;  %6701 = vst [vmem:[#allocation15_spill] sm:$0xff] %v5857_v2  ;;  %6702 = vst [vmem:[#allocation16_spill] sm:$0xff] %v5865_v43 }
 0x2ce   : > { %v4506_v4 = vpop.f32.mrb[16].mxu1  ;;  %v4710_v41 = vpack.c.bf16 %v5618_v35, %v5621_v3 }
 0x2cf   : > { %v5628_v49 = vadd.f32 %v4506_v4, %v5547_v58  ;;  %v1502_v6 = vpop.f32.mrb[17].mxu1  ;;  %v5870_v4 = vld [vmem:[%s6659_s3 + $0x128] sm:$0xff] }
 0x2d0   : > { %v5631_v47 = vadd.f32 %v5547_v58, %v1502_v6  ;;  %4711 = vmatpush1.bf16.msra.mxu0 %v4710_v41  ;;  %4765 = vmatpush1.bf16.msra.mxu1 %v4710_v41  ;;  %6703 = vst [vmem:[#allocation17_spill] sm:$0xff] %v5870_v4  ;;  %v5878_v41 = vld [vmem:[%s6659_s3 + $0x120] sm:$0xff]  ;;  %v5883_v6 = vld [vmem:[%s6659_s3 + $0x138] sm:$0xff] }
 0x2d1   : > { %4712 = vmatprep.subr.bf16.mxu0 %v6669_v48  ;;  %4756 = vmatprep.subr.bf16.mxu1 %v6669_v48  ;;  %6704 = vst [vmem:[#allocation18_spill] sm:$0xff] %v5878_v41  ;;  %6705 = vst [vmem:[#allocation19_spill] sm:$0xff] %v5883_v6 }
 0x2d2   : > { %v4509_v7 = vpop.f32.mrb[18].mxu1  ;;  %v4713_v61 = vpack.c.bf16 %v5628_v49, %v5631_v47 }
 0x2d3   : > { %v5638_v27 = vadd.f32 %v4509_v7, %v5547_v58  ;;  %v1512_v56 = vpop.f32.mrb[19].mxu1  ;;  %v5891_v7 = vld [vmem:[%s6659_s3 + $0x130] sm:$0xff] }
 0x2d4   : > { %v5641_v9 = vadd.f32 %v5547_v58, %v1512_v56  ;;  %4714 = vmatpush1.bf16.msra.mxu0 %v4713_v61  ;;  %4766 = vmatpush1.bf16.msra.mxu1 %v4713_v61  ;;  %v5713_v58 = vld [vmem:[%s6659_s3 + $0x38] sm:$0xff]  ;;  %6706 = vst [vmem:[#allocation20_spill] sm:$0xff] %v5891_v7  ;;  %v4025_v61 = vld [vmem:[%s6662_s6 + $0x8] sm:$0xff]  ;;  %v1521_v56 = vld [vmem:[%s6662_s6] sm:$0xff] }
 0x2d5   : > { %4715 = vmatprep.subr.bf16.mxu0 %v6669_v48  ;;  %4757 = vmatprep.subr.bf16.mxu1 %v6669_v48 }
 0x2d6   : > { %v4716_v8 = vpack.c.bf16 %v5638_v27, %v5641_v9 }
 0x2d8   : > { %4717 = vmatpush1.bf16.msra.mxu0 %v4716_v8  ;;  %4767 = vmatpush1.bf16.msra.mxu1 %v4716_v8 }
 0x2d9   : > { %4718 = vmatprep.subr.bf16.mxu1 %v6669_v48  ;;  %4510 = vmatprep.subr.mxu0 %v4025_v61 }
 0x2db   : > { %1688 = vmatmul.mubr.f32.vlgmr.msra.gmra.mrb[20].mxu0 %v5650_v10  ;;  %1723 = vmatmul.mubr.f32.vlgmr.msra.gmra.mrb[20].mxu1 %v5655_v5 }
 0x2dc   : > { %4006 = vmatprep.mubr.msk.f32.mxu0 %vm1562_vm3, %v5660_v11  ;;  %4013 = vmatprep.mubr.msk.f32.mxu1 %vm1562_vm3, %v5665_v18 }
 0x2dd   : > { %4511 = vmatpush3.msra.mxu0 %v4025_v61 }
 0x2de   : > { %4542 = vmatprep.subr.mxu0 %v1521_v56 }
 0x2df   : > { %1693 = vmatmul.mubr.f32.gmra.mrb[22].mxu0 %v5677_v12  ;;  %1728 = vmatmul.mubr.f32.gmra.mrb[22].mxu1 %v5682_v16 }
 0x2e0   : > { %4007 = vmatprep.mubr.msk.f32.mxu0 %vm1562_vm3, %v5687_v13  ;;  %4014 = vmatprep.mubr.msk.f32.mxu1 %vm1562_vm3, %v5692_v30 }
 0x2e3   : > { %1698 = vmatmul.mubr.f32.gmra.mrb[24].mxu0 %v5703_v14  ;;  %1733 = vmatmul.mubr.f32.gmra.mrb[24].mxu1 %v5708_v24 }
 0x2e4   : > { %4008 = vmatprep.mubr.msk.f32.mxu0 %vm1562_vm3, %v5713_v58  ;;  %4015 = vmatprep.mubr.msk.f32.mxu1 %vm1562_vm3, %v5718_v15 }
 0x2e7   : > { %1703 = vmatmul.mubr.f32.gmra.mrb[26].mxu0 %v5729_v19  ;;  %1738 = vmatmul.mubr.f32.gmra.mrb[26].mxu1 %v5734_v21 }
 0x2e8   : > { %4009 = vmatprep.mubr.msk.f32.mxu0 %vm1562_vm3, %v5739_v22  ;;  %4016 = vmatprep.mubr.msk.f32.mxu1 %vm1562_vm3, %v5744_v25 }
 0x2eb   : > { %1708 = vmatmul.mubr.f32.gmra.mrb[28].mxu0 %v5755_v28  ;;  %1743 = vmatmul.mubr.f32.gmra.mrb[28].mxu1 %v5760_v32 }
 0x2ec   : > { %4010 = vmatprep.mubr.msk.f32.mxu0 %vm1562_vm3, %v5765_v34  ;;  %4017 = vmatprep.mubr.msk.f32.mxu1 %vm1562_vm3, %v5770_v38 }
 0x2ef   : > { %1713 = vmatmul.mubr.f32.gmra.mrb[30].mxu0 %v5781_v39  ;;  %1748 = vmatmul.mubr.f32.gmra.mrb[30].mxu1 %v5786_v44 }
 0x2f0   : > { %4011 = vmatprep.mubr.msk.f32.mxu0 %vm1562_vm3, %v5791_v46  ;;  %4018 = vmatprep.mubr.msk.f32.mxu1 %vm1562_vm3, %v5796_v50 }
 0x2f3   : > { %1718 = vmatmul.mubr.f32.gmra.mrb[32].mxu0 %v5807_v52  ;;  %1753 = vmatmul.mubr.f32.gmra.mrb[32].mxu1 %v5812_v54 }
 0x2f4   : > { %4019 = vmatprep.mubr.msk.f32.mxu1 %vm1562_vm3, %v5817_v55 }
 0x2f7   : > { %1758 = vmatmul.mubr.f32.gmra.mrb[34].mxu1 %v5826_v59 }
 0x2f8   : > { %4020 = vmatprep.mubr.msk.f32.mxu1 %vm1562_vm3, %v5831_v62 }
 0x2fb   : > { %1763 = vmatmul.mubr.f32.gmra.mrb[36].mxu1 %v5839_v31 }
 0x2fc   : > { %4021 = vmatprep.mubr.msk.f32.mxu1 %vm1562_vm3, %v5844_v29  ;;  %v6707_v29 = vmov 0.0|0.0  }
 0x2ff   : > { %1768 = vmatmul.mubr.f32.gmra.mrb[38].mxu1 %v5852_v1 }
 0x300   : > { %4022 = vmatprep.mubr.msk.f32.mxu1 %vm1562_vm3, %v5857_v2 }
 0x303   : > { %1773 = vmatmul.mubr.f32.gmra.mrb[40].mxu1 %v5865_v43 }
 0x304   : > { %4023 = vmatprep.mubr.msk.f32.mxu1 %vm1562_vm3, %v5870_v4 }
 0x307   : > { %1778 = vmatmul.mubr.f32.gmra.mrb[42].mxu1 %v5878_v41 }
 0x308   : > { %4024 = vmatprep.mubr.msk.f32.mxu1 %vm1562_vm3, %v5883_v6 }
 0x30b   : > { %1783 = vmatmul.mubr.f32.gmra.mrb[44].mxu1 %v5891_v7 }
 0x30c   : > { %4066 = vmatprep.mubr.msk.f32.mxu1 %vm1562_vm3, %v5533_v42 }
 0x3ae   : > { %v1689_v8 = vpop.f32.mrb[20].mxu0  ;;  %v1724_v48 = vpop.f32.mrb[20].mxu1 }
 0x3af   : > { %v1691_v6 = vpop.f32.mrb[21].mxu0  ;;  %4512 = vmatprep.mubr.msk.f32.mxu0 %vm1790_vm4, %v1689_v8  ;;  %v1726_v7 = vpop.f32.mrb[21].mxu1 }
 0x3b2   : > { %v1694_v41 = vpop.f32.mrb[22].mxu0  ;;  %v1729_v42 = vpop.f32.mrb[22].mxu1 }
 0x3b3   : > { %v4719_v4 = vpack.c.bf16 %v1694_v41, %v1689_v8  ;;  %v1696_v43 = vpop.f32.mrb[23].mxu0  ;;  %4513 = vmatmul.mubr.msk.f32.vlgmr.msra.gmra.mrb[34].mxu0 %vm1790_vm4, %v1694_v41  ;;  %v1731_v2 = vpop.f32.mrb[23].mxu1 }
 0x3b4   : > { %4543 = vmatpush3.msra.mxu0 %v1521_v56 }
 0x3b5   : > { %4720 = vmatpush1.bf16.msra.mxu1 %v4719_v4 }
 0x3b6   : > { %v1699_v61 = vpop.f32.mrb[24].mxu0  ;;  %v1734_v1 = vpop.f32.mrb[24].mxu1  ;;  %4721 = vmatprep.subr.bf16.mxu1 %v6707_v29 }
 0x3b7   : > { %v1701_v31 = vpop.f32.mrb[25].mxu0  ;;  %4515 = vmatprep.mubr.msk.f32.mxu0 %vm1790_vm4, %v1699_v61  ;;  %v4731_v6 = vpack.c.bf16 %v1734_v1, %v1729_v42  ;;  %v1736_v62 = vpop.f32.mrb[25].mxu1 }
 0x3ba   : > { %v1704_v59 = vpop.f32.mrb[26].mxu0  ;;  %v1739_v7 = vpop.f32.mrb[26].mxu1 }
 0x3bb   : > { %v4722_v55 = vpack.c.bf16 %v1704_v59, %v1699_v61  ;;  %v1706_v54 = vpop.f32.mrb[27].mxu0  ;;  %4516 = vmatmul.mubr.msk.f32.gmra.mrb[36].mxu0 %vm1790_vm4, %v1704_v59  ;;  %v1741_v43 = vpop.f32.mrb[27].mxu1 }
 0x3bd   : > { %4723 = vmatpush1.bf16.msra.mxu1 %v4722_v55 }
 0x3be   : > { %v1709_v2 = vpop.f32.mrb[28].mxu0  ;;  %v1744_v41 = vpop.f32.mrb[28].mxu1  ;;  %4724 = vmatprep.subr.bf16.mxu1 %v6707_v29 }
 0x3bf   : > { %v1711_v4 = vpop.f32.mrb[29].mxu0  ;;  %4518 = vmatprep.mubr.msk.f32.mxu0 %vm1790_vm4, %v1709_v2  ;;  %v4734_v31 = vpack.c.bf16 %v1744_v41, %v1739_v7  ;;  %v1746_v56 = vpop.f32.mrb[29].mxu1 }
 0x3c2   : > { %v1714_v8 = vpop.f32.mrb[30].mxu0  ;;  %v1749_v50 = vpop.f32.mrb[30].mxu1 }
 0x3c3   : > { %v4725_v62 = vpack.c.bf16 %v1714_v8, %v1709_v2  ;;  %v1716_v44 = vpop.f32.mrb[31].mxu0  ;;  %4519 = vmatmul.mubr.msk.f32.gmra.mrb[38].mxu0 %vm1790_vm4, %v1714_v8  ;;  %v1751_v54 = vpop.f32.mrb[31].mxu1 }
 0x3c5   : > { %4726 = vmatpush1.bf16.msra.mxu1 %v4725_v62 }
 0x3c6   : > { %v1719_v59 = vpop.f32.mrb[32].mxu0  ;;  %4727 = vmatprep.subr.bf16.mxu1 %v6707_v29  ;;  %v1754_v55 = vpop.f32.mrb[32].mxu1 }
 0x3c7   : > { %v4728_v61 = vpack.c.bf16 %v1724_v48, %v1719_v59  ;;  %v1721_v43 = vpop.f32.mrb[33].mxu0  ;;  %4521 = vmatprep.mubr.msk.f32.mxu0 %vm1790_vm4, %v1719_v59  ;;  %v4737_v4 = vpack.c.bf16 %v1754_v55, %v1749_v50  ;;  %v1756_v38 = vpop.f32.mrb[33].mxu1 }
 0x3c8   : > { %4522 = vmatmul.mubr.msk.f32.gmra.mrb[40].mxu0 %vm1790_vm4, %v1724_v48 }
 0x3c9   : > { %4524 = vmatprep.mubr.msk.f32.mxu0 %vm1790_vm4, %v1729_v42  ;;  %4729 = vmatpush1.bf16.msra.mxu1 %v4728_v61 }
 0x3ca   : > { %4730 = vmatprep.subr.bf16.mxu1 %v6707_v29  ;;  %v1759_v44 = vpop.f32.mrb[34].mxu1 }
 0x3cb   : > { %v1761_v2 = vpop.f32.mrb[35].mxu1 }
 0x3cc   : > { %4525 = vmatmul.mubr.msk.f32.gmra.mrb[42].mxu0 %vm1790_vm4, %v1734_v1 }
 0x3cd   : > { %4527 = vmatprep.mubr.msk.f32.mxu0 %vm1790_vm4, %v1739_v7  ;;  %4732 = vmatpush1.bf16.msra.mxu1 %v4731_v6 }
 0x3ce   : > { %4733 = vmatprep.subr.bf16.mxu1 %v6707_v29  ;;  %v1764_v56 = vpop.f32.mrb[36].mxu1 }
 0x3cf   : > { %v4740_v8 = vpack.c.bf16 %v1764_v56, %v1759_v44  ;;  %v1766_v62 = vpop.f32.mrb[37].mxu1 }
 0x3d0   : > { %4528 = vmatmul.mubr.msk.f32.gmra.mrb[44].mxu0 %vm1790_vm4, %v1744_v41 }
 0x3d1   : > { %4530 = vmatprep.mubr.msk.f32.mxu0 %vm1790_vm4, %v1749_v50  ;;  %4735 = vmatpush1.bf16.msra.mxu1 %v4734_v31 }
 0x3d2   : > { %4736 = vmatprep.subr.bf16.mxu1 %v6707_v29  ;;  %v1769_v48 = vpop.f32.mrb[38].mxu1 }
 0x3d3   : > { %v1771_v38 = vpop.f32.mrb[39].mxu1 }
 0x3d4   : > { %4531 = vmatmul.mubr.msk.f32.gmra.mrb[46].mxu0 %vm1790_vm4, %v1754_v55 }
 0x3d5   : > { %4533 = vmatprep.mubr.msk.f32.mxu0 %vm1790_vm4, %v1759_v44  ;;  %4738 = vmatpush1.bf16.msra.mxu1 %v4737_v4 }
 0x3d6   : > { %4739 = vmatprep.subr.bf16.mxu1 %v6707_v29  ;;  %v1774_v1 = vpop.f32.mrb[40].mxu1 }
 0x3d7   : > { %v4743_v42 = vpack.c.bf16 %v1774_v1, %v1769_v48  ;;  %v1776_v6 = vpop.f32.mrb[41].mxu1 }
 0x3d8   : > { %4534 = vmatmul.mubr.msk.f32.gmra.mrb[48].mxu0 %vm1790_vm4, %v1764_v56 }
 0x3d9   : > { %4741 = vmatpush1.bf16.msra.mxu1 %v4740_v8  ;;  %4536 = vmatprep.mubr.msk.f32.mxu0 %vm1790_vm4, %v1769_v48 }
 0x3da   : > { %v1779_v50 = vpop.f32.mrb[42].mxu1  ;;  %4742 = vmatprep.subr.bf16.mxu1 %v6707_v29 }
 0x3db   : > { %v1781_v7 = vpop.f32.mrb[43].mxu1 }
 0x3dc   : > { %4537 = vmatmul.mubr.msk.f32.gmra.mrb[50].mxu0 %vm1790_vm4, %v1774_v1 }
 0x3dd   : > { %4744 = vmatpush1.bf16.msra.mxu1 %v4743_v42  ;;  %4539 = vmatprep.mubr.msk.f32.mxu0 %vm1790_vm4, %v1779_v50 }
 0x3de   : > { %v1784_v41 = vpop.f32.mrb[44].mxu1  ;;  %4745 = vmatprep.subr.bf16.mxu1 %v6707_v29 }
 0x3df   : > { %v4746_v31 = vpack.c.bf16 %v1784_v41, %v1779_v50  ;;  %v1786_v54 = vpop.f32.mrb[45].mxu1 }
 0x3e0   : > { %4540 = vmatmul.mubr.msk.f32.gmra.mrb[52].mxu0 %vm1790_vm4, %v1784_v41 }
 0x3e1   : > { %4544 = vmatprep.mubr.msk.f32.mxu0 %vm1790_vm4, %v5553_v20  ;;  %4747 = vmatpush1.bf16.msra.mxu1 %v4746_v31 }
 0x3e4   : > { %4545 = vmatmul.mubr.msk.f32.vlgmr.msra.gmra.mrb[34].mxu0 %vm1790_vm4, %v5550_v17  ;;  %2306 = vmatmul.mubr.f32.vlgmr.msra.gmra.mrb[46].mxu1 %v5650_v10  ;;  %v6709_v10 = vld [vmem:[#allocation6_spill] sm:$0xff] }
 0x3e5   : > { %4547 = vmatprep.mubr.msk.f32.mxu0 %vm1790_vm4, %v5561_v26  ;;  %4067 = vmatprep.mubr.msk.f32.mxu1 %vm1562_vm3, %v5660_v11  ;;  %v6711_v11 = vld [vmem:[#allocation8_spill] sm:$0xff] }
 0x3e8   : > { %4548 = vmatmul.mubr.msk.f32.gmra.mrb[36].mxu0 %vm1790_vm4, %v5558_v23  ;;  %2311 = vmatmul.mubr.f32.gmra.mrb[48].mxu1 %v5677_v12  ;;  %v6713_v12 = vld [vmem:[#allocation10_spill] sm:$0xff] }
 0x3e9   : > { %4550 = vmatprep.mubr.msk.f32.mxu0 %vm1790_vm4, %v5571_v36  ;;  %4068 = vmatprep.mubr.msk.f32.mxu1 %vm1562_vm3, %v5687_v13  ;;  %v6715_v13 = vld [vmem:[#allocation12_spill] sm:$0xff] }
 0x3ec   : > { %4551 = vmatmul.mubr.msk.f32.gmra.mrb[38].mxu0 %vm1790_vm4, %v5568_v33  ;;  %2316 = vmatmul.mubr.f32.gmra.mrb[50].mxu1 %v5703_v14  ;;  %v6717_v14 = vld [vmem:[#allocation14_spill] sm:$0xff] }
 0x3ed   : > { %4553 = vmatprep.mubr.msk.f32.mxu0 %vm1790_vm4, %v5581_v45  ;;  %4069 = vmatprep.mubr.msk.f32.mxu1 %vm1562_vm3, %v5713_v58  ;;  %v6719_v58 = vld [vmem:[#allocation16_spill] sm:$0xff] }
 0x3f0   : > { %4554 = vmatmul.mubr.msk.f32.gmra.mrb[40].mxu0 %vm1790_vm4, %v5578_v40  ;;  %2321 = vmatmul.mubr.f32.gmra.mrb[52].mxu1 %v5729_v19  ;;  %v6721_v19 = vld [vmem:[#allocation18_spill] sm:$0xff] }
 0x3f1   : > { %4556 = vmatprep.mubr.msk.f32.mxu0 %vm1790_vm4, %v5591_v53  ;;  %4070 = vmatprep.mubr.msk.f32.mxu1 %vm1562_vm3, %v5739_v22  ;;  %v6723_v22 = vld [vmem:[#allocation20_spill] sm:$0xff] }
 0x3f4   : > { %4557 = vmatmul.mubr.msk.f32.gmra.mrb[42].mxu0 %vm1790_vm4, %v5588_v51  ;;  %2326 = vmatmul.mubr.f32.gmra.mrb[54].mxu1 %v5755_v28  ;;  %v4108_v28 = vld [vmem:[%s6664_s8 + $0x8] sm:$0xff] }
 0x3f5   : > { %4559 = vmatprep.mubr.msk.f32.mxu0 %vm1790_vm4, %v5601_v60  ;;  %4071 = vmatprep.mubr.msk.f32.mxu1 %vm1562_vm3, %v5765_v34 }
 0x3f6   : > { %4606 = vmatprep.subr.mxu1 %v4108_v28 }
 0x3f7   : > { %4607 = vmatpush3.msra.mxu1 %v4108_v28 }
 0x3f8   : > { %4560 = vmatmul.mubr.msk.f32.gmra.mrb[44].mxu0 %vm1790_vm4, %v5598_v57  ;;  %2331 = vmatmul.mubr.f32.gmra.mrb[56].mxu1 %v5781_v39 }
 0x3f9   : > { %4562 = vmatprep.mubr.msk.f32.mxu0 %vm1790_vm4, %v5611_v37  ;;  %4072 = vmatprep.mubr.msk.f32.mxu1 %vm1562_vm3, %v5791_v46 }
 0x3fc   : > { %4563 = vmatmul.mubr.msk.f32.gmra.mrb[46].mxu0 %vm1790_vm4, %v5608_v0  ;;  %2336 = vmatmul.mubr.f32.gmra.mrb[58].mxu1 %v5807_v52 }
 0x3fd   : > { %4565 = vmatprep.mubr.msk.f32.mxu0 %vm1790_vm4, %v5621_v3  ;;  %4073 = vmatprep.mubr.msk.f32.mxu1 %vm1562_vm3, %v5538_v63  ;;  %v6708_v63 = vld [vmem:[#allocation5_spill] sm:$0xff] }
 0x400   : > { %4566 = vmatmul.mubr.msk.f32.gmra.mrb[48].mxu0 %vm1790_vm4, %v5618_v35  ;;  %2341 = vmatmul.mubr.f32.gmra.mrb[60].mxu1 %v5655_v5  ;;  %v6710_v5 = vld [vmem:[#allocation7_spill] sm:$0xff] }
 0x401   : > { %4568 = vmatprep.mubr.msk.f32.mxu0 %vm1790_vm4, %v5631_v47  ;;  %4074 = vmatprep.mubr.msk.f32.mxu1 %vm1562_vm3, %v5665_v18  ;;  %v6712_v18 = vld [vmem:[#allocation9_spill] sm:$0xff] }
 0x404   : > { %4569 = vmatmul.mubr.msk.f32.gmra.mrb[50].mxu0 %vm1790_vm4, %v5628_v49  ;;  %2346 = vmatmul.mubr.f32.gmra.mrb[62].mxu1 %v5682_v16  ;;  %v6714_v16 = vld [vmem:[#allocation11_spill] sm:$0xff] }
 0x405   : > { %4571 = vmatprep.mubr.msk.f32.mxu0 %vm1790_vm4, %v5641_v9  ;;  %4075 = vmatprep.mubr.msk.f32.mxu1 %vm1562_vm3, %v5692_v30  ;;  %v6716_v30 = vld [vmem:[#allocation13_spill] sm:$0xff] }
 0x408   : > { %4572 = vmatmul.mubr.msk.f32.gmra.mrb[52].mxu0 %vm1790_vm4, %v5638_v27  ;;  %2351 = vmatmul.mubr.f32.gmra.mrb[64].mxu1 %v5708_v24  ;;  %v6718_v24 = vld [vmem:[#allocation15_spill] sm:$0xff] }
 0x409   : > { %4076 = vmatprep.mubr.msk.f32.mxu1 %vm1562_vm3, %v5718_v15  ;;  %v6720_v15 = vld [vmem:[#allocation17_spill] sm:$0xff] }
 0x40c   : > { %2356 = vmatmul.mubr.f32.gmra.mrb[66].mxu1 %v5734_v21  ;;  %v6722_v21 = vld [vmem:[#allocation19_spill] sm:$0xff] }
 0x40d   : > { %4077 = vmatprep.mubr.msk.f32.mxu1 %vm1562_vm3, %v5744_v25  ;;  %v4086_v25 = vld [vmem:[%s6662_s6 + $0x10] sm:$0xff] }
 0x40e   : > { %4574 = vmatprep.subr.mxu0 %v4086_v25 }
 0x40f   : > { %4575 = vmatpush3.msra.mxu0 %v4086_v25 }
 0x410   : > { %2361 = vmatmul.mubr.f32.gmra.mrb[68].mxu1 %v5760_v32 }
 0x411   : > { %4078 = vmatprep.mubr.msk.f32.mxu1 %vm1562_vm3, %v6708_v63 }
 0x414   : > { %2366 = vmatmul.mubr.f32.gmra.mrb[70].mxu1 %v6709_v10 }
 0x415   : > { %4079 = vmatprep.mubr.msk.f32.mxu1 %vm1562_vm3, %v6710_v5 }
 0x418   : > { %2371 = vmatmul.mubr.f32.gmra.mrb[72].mxu1 %v6711_v11 }
 0x419   : > { %4080 = vmatprep.mubr.msk.f32.mxu1 %vm1562_vm3, %v6712_v18 }
 0x41c   : > { %2376 = vmatmul.mubr.f32.gmra.mrb[74].mxu1 %v6713_v12 }
 0x41d   : > { %4081 = vmatprep.mubr.msk.f32.mxu1 %vm1562_vm3, %v6714_v16 }
 0x420   : > { %2381 = vmatmul.mubr.f32.gmra.mrb[76].mxu1 %v6715_v13 }
 0x421   : > { %4082 = vmatprep.mubr.msk.f32.mxu1 %vm1562_vm3, %v6716_v30 }
 0x424   : > { %2386 = vmatmul.mubr.f32.gmra.mrb[78].mxu1 %v6717_v14 }
 0x425   : > { %4083 = vmatprep.mubr.msk.f32.mxu1 %vm1562_vm3, %v6718_v24 }
 0x428   : > { %2391 = vmatmul.mubr.f32.gmra.mrb[80].mxu1 %v6719_v58 }
 0x429   : > { %4084 = vmatprep.mubr.msk.f32.mxu1 %vm1562_vm3, %v6720_v15 }
 0x42c   : > { %2396 = vmatmul.mubr.f32.gmra.mrb[82].mxu1 %v6721_v19 }
 0x42d   : > { %4085 = vmatprep.mubr.msk.f32.mxu1 %vm1562_vm3, %v6722_v21 }
 0x430   : > { %2401 = vmatmul.mubr.f32.gmra.mrb[84].mxu1 %v6723_v22 }
 0x4b7   : > { %v2307_v32 = vpop.f32.mrb[46].mxu1 }
 0x4b8   : > { %v2406_v34 = vmul.f32 2.0, %v2307_v32  ;;  %v2309_v39 = vpop.f32.mrb[47].mxu1 }
 0x4ba   : > { %v2426_v46 = vsub.f32 %v2406_v34, %v5553_v20 }
 0x4bb   : > { %v2312_v52 = vpop.f32.mrb[48].mxu1 }
 0x4bc   : > { %v2407_v29 = vmul.f32 2.0, %v2312_v52  ;;  %4576 = vmatprep.mubr.msk.f32.mxu0 %vm1790_vm4, %v2426_v46  ;;  %v2314_v59 = vpop.f32.mrb[49].mxu1 }
 0x4be   : > { %v2427_v55 = vsub.f32 %v2407_v29, %v5550_v17 }
 0x4bf   : > { %v2317_v61 = vpop.f32.mrb[50].mxu1 }
 0x4c0   : > { %v2408_v43 = vmul.f32 2.0, %v2317_v61  ;;  %4577 = vmatmul.mubr.msk.f32.vlgmr.msra.gmra.mrb[34].mxu0 %vm1790_vm4, %v2427_v55  ;;  %v2319_v4 = vpop.f32.mrb[51].mxu1 }
 0x4c2   : > { %v2428_v44 = vsub.f32 %v2408_v43, %v5561_v26 }
 0x4c3   : > { %v2322_v2 = vpop.f32.mrb[52].mxu1 }
 0x4c4   : > { %v2409_v56 = vmul.f32 2.0, %v2322_v2  ;;  %4579 = vmatprep.mubr.msk.f32.mxu0 %vm1790_vm4, %v2428_v44  ;;  %v2324_v8 = vpop.f32.mrb[53].mxu1 }
 0x4c6   : > { %v2429_v62 = vsub.f32 %v2409_v56, %v5558_v23 }
 0x4c7   : > { %v2327_v48 = vpop.f32.mrb[54].mxu1 }
 0x4c8   : > { %v2410_v38 = vmul.f32 2.0, %v2327_v48  ;;  %4580 = vmatmul.mubr.msk.f32.gmra.mrb[36].mxu0 %vm1790_vm4, %v2429_v62  ;;  %v2329_v1 = vpop.f32.mrb[55].mxu1 }
 0x4ca   : > { %v2430_v42 = vsub.f32 %v2410_v38, %v5571_v36 }
 0x4cb   : > { %v2332_v6 = vpop.f32.mrb[56].mxu1 }
 0x4cc   : > { %v2411_v50 = vmul.f32 2.0, %v2332_v6  ;;  %4582 = vmatprep.mubr.msk.f32.mxu0 %vm1790_vm4, %v2430_v42  ;;  %v2334_v7 = vpop.f32.mrb[57].mxu1 }
 0x4ce   : > { %v2431_v41 = vsub.f32 %v2411_v50, %v5568_v33 }
 0x4cf   : > { %v2337_v31 = vpop.f32.mrb[58].mxu1 }
 0x4d0   : > { %v2412_v54 = vmul.f32 2.0, %v2337_v31  ;;  %4583 = vmatmul.mubr.msk.f32.gmra.mrb[38].mxu0 %vm1790_vm4, %v2431_v41  ;;  %v2339_v63 = vpop.f32.mrb[59].mxu1 }
 0x4d2   : > { %v2432_v10 = vsub.f32 %v2412_v54, %v5581_v45 }
 0x4d3   : > { %v2342_v5 = vpop.f32.mrb[60].mxu1 }
 0x4d4   : > { %v2413_v11 = vmul.f32 2.0, %v2342_v5  ;;  %4585 = vmatprep.mubr.msk.f32.mxu0 %vm1790_vm4, %v2432_v10  ;;  %v2344_v18 = vpop.f32.mrb[61].mxu1 }
 0x4d6   : > { %v2433_v12 = vsub.f32 %v2413_v11, %v5578_v40 }
 0x4d7   : > { %v2347_v16 = vpop.f32.mrb[62].mxu1 }
 0x4d8   : > { %v2414_v13 = vmul.f32 2.0, %v2347_v16  ;;  %4586 = vmatmul.mubr.msk.f32.gmra.mrb[40].mxu0 %vm1790_vm4, %v2433_v12  ;;  %v2349_v30 = vpop.f32.mrb[63].mxu1 }
 0x4da   : > { %v2434_v14 = vsub.f32 %v2414_v13, %v5591_v53 }
 0x4db   : > { %v2352_v24 = vpop.f32.mrb[64].mxu1 }
 0x4dc   : > { %v2415_v58 = vmul.f32 2.0, %v2352_v24  ;;  %4588 = vmatprep.mubr.msk.f32.mxu0 %vm1790_vm4, %v2434_v14  ;;  %v2354_v15 = vpop.f32.mrb[65].mxu1  ;;  %v2760_v24 = vld [vmem:[%s6664_s8] sm:$0xff] }
 0x4dd   : > { %4632 = vmatprep.subr.mxu1 %v2760_v24 }
 0x4de   : > { %v2435_v19 = vsub.f32 %v2415_v58, %v5588_v51 }
 0x4df   : > { %v2357_v21 = vpop.f32.mrb[66].mxu1 }
 0x4e0   : > { %v2416_v22 = vmul.f32 2.0, %v2357_v21  ;;  %4589 = vmatmul.mubr.msk.f32.gmra.mrb[42].mxu0 %vm1790_vm4, %v2435_v19  ;;  %v2359_v25 = vpop.f32.mrb[67].mxu1  ;;  %v6085_v19 = vld [vmem:[%s6663_s7] ss:$0 sm:$0xff] }
 0x4e2   : > { %v2436_v28 = vsub.f32 %v2416_v22, %v5601_v60 }
 0x4e3   : > { %v2362_v32 = vpop.f32.mrb[68].mxu1 }
 0x4e4   : > { %v2417_v34 = vmul.f32 2.0, %v2362_v32  ;;  %4591 = vmatprep.mubr.msk.f32.mxu0 %vm1790_vm4, %v2436_v28  ;;  %v2364_v39 = vpop.f32.mrb[69].mxu1 }
 0x4e6   : > { %v2437_v46 = vsub.f32 %v2417_v34, %v5598_v57 }
 0x4e7   : > { %v2367_v52 = vpop.f32.mrb[70].mxu1 }
 0x4e8   : > { %v2418_v29 = vmul.f32 2.0, %v2367_v52  ;;  %4592 = vmatmul.mubr.msk.f32.gmra.mrb[44].mxu0 %vm1790_vm4, %v2437_v46  ;;  %v2369_v59 = vpop.f32.mrb[71].mxu1 }
 0x4ea   : > { %v2438_v55 = vsub.f32 %v2418_v29, %v5611_v37  ;;  %v6103_v29 = vld [vmem:[%s6664_s8 + $0x10] sm:$0xff] }
 0x4eb   : > { %v2372_v61 = vpop.f32.mrb[72].mxu1 }
 0x4ec   : > { %v2419_v43 = vmul.f32 2.0, %v2372_v61  ;;  %4594 = vmatprep.mubr.msk.f32.mxu0 %vm1790_vm4, %v2438_v55  ;;  %v2374_v4 = vpop.f32.mrb[73].mxu1 }
 0x4ee   : > { %v2439_v44 = vsub.f32 %v2419_v43, %v5608_v0 }
 0x4ef   : > { %v2377_v2 = vpop.f32.mrb[74].mxu1 }
 0x4f0   : > { %v2420_v56 = vmul.f32 2.0, %v2377_v2  ;;  %4595 = vmatmul.mubr.msk.f32.gmra.mrb[46].mxu0 %vm1790_vm4, %v2439_v44  ;;  %v2379_v8 = vpop.f32.mrb[75].mxu1 }
 0x4f2   : > { %v2440_v62 = vsub.f32 %v2420_v56, %v5621_v3 }
 0x4f3   : > { %v2382_v48 = vpop.f32.mrb[76].mxu1 }
 0x4f4   : > { %v2421_v38 = vmul.f32 2.0, %v2382_v48  ;;  %4597 = vmatprep.mubr.msk.f32.mxu0 %vm1790_vm4, %v2440_v62  ;;  %v2384_v1 = vpop.f32.mrb[77].mxu1 }
 0x4f6   : > { %v2441_v42 = vsub.f32 %v2421_v38, %v5618_v35 }
 0x4f7   : > { %v2387_v6 = vpop.f32.mrb[78].mxu1 }
 0x4f8   : > { %v2422_v50 = vmul.f32 2.0, %v2387_v6  ;;  %4598 = vmatmul.mubr.msk.f32.gmra.mrb[48].mxu0 %vm1790_vm4, %v2441_v42  ;;  %v2389_v7 = vpop.f32.mrb[79].mxu1 }
 0x4fa   : > { %v2442_v41 = vsub.f32 %v2422_v50, %v5631_v47 }
 0x4fb   : > { %v2392_v31 = vpop.f32.mrb[80].mxu1 }
 0x4fc   : > { %v2423_v54 = vmul.f32 2.0, %v2392_v31  ;;  %4600 = vmatprep.mubr.msk.f32.mxu0 %vm1790_vm4, %v2442_v41  ;;  %v2394_v63 = vpop.f32.mrb[81].mxu1 }
 0x4fe   : > { %v2443_v10 = vsub.f32 %v2423_v54, %v5628_v49 }
 0x4ff   : > { %v2397_v5 = vpop.f32.mrb[82].mxu1 }
 0x500   : > { %v2424_v11 = vmul.f32 2.0, %v2397_v5  ;;  %4601 = vmatmul.mubr.msk.f32.gmra.mrb[50].mxu0 %vm1790_vm4, %v2443_v10  ;;  %v2399_v18 = vpop.f32.mrb[83].mxu1 }
 0x502   : > { %v2444_v12 = vsub.f32 %v2424_v11, %v5641_v9 }
 0x503   : > { %v2402_v16 = vpop.f32.mrb[84].mxu1 }
 0x504   : > { %v2425_v13 = vmul.f32 2.0, %v2402_v16  ;;  %4603 = vmatprep.mubr.msk.f32.mxu0 %vm1790_vm4, %v2444_v12  ;;  %v2404_v30 = vpop.f32.mrb[85].mxu1 }
 0x506   : > { %v2445_v14 = vsub.f32 %v2425_v13, %v5638_v27 }
 0x508   : > { %4604 = vmatmul.mubr.msk.f32.gmra.mrb[52].mxu0 %vm1790_vm4, %v2445_v14 }
 0x593   : > { %v6078_v58 = vpop.f32.mrb[34].mxu0 }
 0x594   : > { %v6080_v15 = vpop.f32.mrb[35].mxu0 }
 0x59b   : > { %v4581_v21 = vpop.f32.mrb[36].mxu0 }
 0x59c   : > { %v2703_v22 = vadd.f32 %v4581_v21, %v6085_v19  ;;  %v2584_v25 = vpop.f32.mrb[37].mxu0 }
 0x59d   : > { %v2702_v28 = vadd.f32 %v6085_v19, %v2584_v25 }
 0x59e   : > { %v6090_v32 = vadd.f32 %v2703_v22, %v5558_v23 }
 0x59f   : > { %v6093_v34 = vadd.f32 %v2702_v28, %v5561_v26 }
 0x5a0   : > { %v2743_v46 = vmax.f32 %v6090_v32, 0.0 }
 0x5a1   : > { %v2742_v39 = vmax.f32 %v6093_v34, 0.0 }
 0x5a3   : > { %v4584_v52 = vpop.f32.mrb[38].mxu0  ;;  %4608 = vmatprep.mubr.msk.f32.mxu1 %vm1790_vm4, %v2742_v39 }
 0x5a4   : > { %v2705_v23 = vadd.f32 %v4584_v52, %v6085_v19  ;;  %v2594_v59 = vpop.f32.mrb[39].mxu0  ;;  %4609 = vmatmul.mubr.msk.f32.vlgmr.msra.gmra.mrb[86].mxu1 %vm1790_vm4, %v2743_v46 }
 0x5a5   : > { %v2704_v26 = vadd.f32 %v6085_v19, %v2594_v59  ;;  %4633 = vmatpush3.msra.mxu1 %v2760_v24 }
 0x5a6   : > { %v2725_v55 = vadd.f32 %v2705_v23, %v5568_v33  ;;  %4658 = vmatprep.subr.mxu1 %v6103_v29 }
 0x5a7   : > { %v2724_v61 = vadd.f32 %v2704_v26, %v5571_v36 }
 0x5a8   : > { %v6115_v4 = vmax.f32 %v2725_v55, 0.0 }
 0x5a9   : > { %v6113_v43 = vmax.f32 %v2724_v61, 0.0 }
 0x5ab   : > { %v4587_v44 = vpop.f32.mrb[40].mxu0  ;;  %4611 = vmatprep.mubr.msk.f32.mxu1 %vm1790_vm4, %v6113_v43 }
 0x5ac   : > { %v2707_v2 = vadd.f32 %v4587_v44, %v6085_v19  ;;  %v2604_v56 = vpop.f32.mrb[41].mxu0  ;;  %4612 = vmatmul.mubr.msk.f32.gmra.mrb[88].mxu1 %vm1790_vm4, %v6115_v4 }
 0x5ad   : > { %v2706_v33 = vadd.f32 %v6085_v19, %v2604_v56 }
 0x5ae   : > { %v2727_v8 = vadd.f32 %v2707_v2, %v5578_v40 }
 0x5af   : > { %v2726_v36 = vadd.f32 %v2706_v33, %v5581_v45 }
 0x5b0   : > { %v6127_v48 = vmax.f32 %v2727_v8, 0.0 }
 0x5b1   : > { %v6125_v62 = vmax.f32 %v2726_v36, 0.0 }
 0x5b3   : > { %v4590_v38 = vpop.f32.mrb[42].mxu0  ;;  %4614 = vmatprep.mubr.msk.f32.mxu1 %vm1790_vm4, %v6125_v62 }
 0x5b4   : > { %v2709_v1 = vadd.f32 %v4590_v38, %v6085_v19  ;;  %v2614_v42 = vpop.f32.mrb[43].mxu0  ;;  %4615 = vmatmul.mubr.msk.f32.gmra.mrb[90].mxu1 %vm1790_vm4, %v6127_v48 }
 0x5b5   : > { %v2708_v6 = vadd.f32 %v6085_v19, %v2614_v42 }
 0x5b6   : > { %v2729_v40 = vadd.f32 %v2709_v1, %v5588_v51 }
 0x5b7   : > { %v2728_v45 = vadd.f32 %v2708_v6, %v5591_v53 }
 0x5b8   : > { %v6139_v7 = vmax.f32 %v2729_v40, 0.0 }
 0x5b9   : > { %v6137_v50 = vmax.f32 %v2728_v45, 0.0 }
 0x5bb   : > { %v4593_v41 = vpop.f32.mrb[44].mxu0  ;;  %4617 = vmatprep.mubr.msk.f32.mxu1 %vm1790_vm4, %v6137_v50 }
 0x5bc   : > { %v2711_v31 = vadd.f32 %v4593_v41, %v6085_v19  ;;  %v2624_v54 = vpop.f32.mrb[45].mxu0  ;;  %4618 = vmatmul.mubr.msk.f32.gmra.mrb[92].mxu1 %vm1790_vm4, %v6139_v7 }
 0x5bd   : > { %v2710_v63 = vadd.f32 %v6085_v19, %v2624_v54 }
 0x5be   : > { %v2731_v51 = vadd.f32 %v2711_v31, %v5598_v57 }
 0x5bf   : > { %v2730_v53 = vadd.f32 %v2710_v63, %v5601_v60 }
 0x5c0   : > { %v6151_v5 = vmax.f32 %v2731_v51, 0.0 }
 0x5c1   : > { %v6149_v10 = vmax.f32 %v2730_v53, 0.0 }
 0x5c3   : > { %v4596_v11 = vpop.f32.mrb[46].mxu0  ;;  %4620 = vmatprep.mubr.msk.f32.mxu1 %vm1790_vm4, %v6149_v10 }
 0x5c4   : > { %v2713_v18 = vadd.f32 %v4596_v11, %v6085_v19  ;;  %v2634_v12 = vpop.f32.mrb[47].mxu0  ;;  %4621 = vmatmul.mubr.msk.f32.gmra.mrb[94].mxu1 %vm1790_vm4, %v6151_v5 }
 0x5c5   : > { %v2712_v16 = vadd.f32 %v6085_v19, %v2634_v12 }
 0x5c6   : > { %v2733_v57 = vadd.f32 %v2713_v18, %v5608_v0 }
 0x5c7   : > { %v2732_v60 = vadd.f32 %v2712_v16, %v5611_v37  ;;  %v2700_v37 = vadd.f32 %v6085_v19, %v6080_v15 }
 0x5c8   : > { %v2753_v30 = vmax.f32 %v2733_v57, 0.0 }
 0x5c9   : > { %v2752_v13 = vmax.f32 %v2732_v60, 0.0  ;;  %v2720_v61 = vadd.f32 %v2700_v37, %v5553_v20 }
 0x5cb   : > { %v4599_v14 = vpop.f32.mrb[48].mxu0  ;;  %4623 = vmatprep.mubr.msk.f32.mxu1 %vm1790_vm4, %v2752_v13  ;;  %v2740_v33 = vmax.f32 %v2720_v61, 0.0 }
 0x5cc   : > { %v2715_v24 = vadd.f32 %v4599_v14, %v6085_v19  ;;  %v2644_v21 = vpop.f32.mrb[49].mxu0  ;;  %4624 = vmatmul.mubr.msk.f32.gmra.mrb[96].mxu1 %vm1790_vm4, %v2753_v30 }
 0x5cd   : > { %v2714_v22 = vadd.f32 %v6085_v19, %v2644_v21 }
 0x5ce   : > { %v2735_v25 = vadd.f32 %v2715_v24, %v5618_v35  ;;  %v2701_v35 = vadd.f32 %v6078_v58, %v6085_v19 }
 0x5cf   : > { %v2734_v28 = vadd.f32 %v2714_v22, %v5621_v3 }
 0x5d0   : > { %v2755_v0 = vmax.f32 %v2735_v25, 0.0  ;;  %v2721_v2 = vadd.f32 %v2701_v35, %v5550_v17 }
 0x5d1   : > { %v2754_v52 = vmax.f32 %v2734_v28, 0.0 }
 0x5d2   : > { %v2741_v58 = vmax.f32 %v2721_v2, 0.0 }
 0x5d3   : > { %v4602_v23 = vpop.f32.mrb[50].mxu0  ;;  %4626 = vmatprep.mubr.msk.f32.mxu1 %vm1790_vm4, %v2754_v52 }
 0x5d4   : > { %v2717_v59 = vadd.f32 %v4602_v23, %v6085_v19  ;;  %v2654_v26 = vpop.f32.mrb[51].mxu0  ;;  %4627 = vmatmul.mubr.msk.f32.gmra.mrb[98].mxu1 %vm1790_vm4, %v2755_v0 }
 0x5d5   : > { %v2716_v55 = vadd.f32 %v6085_v19, %v2654_v26 }
 0x5d6   : > { %v2737_v3 = vadd.f32 %v2717_v59, %v5628_v49 }
 0x5d7   : > { %v2736_v44 = vadd.f32 %v2716_v55, %v5631_v47 }
 0x5d8   : > { %v2757_v56 = vmax.f32 %v2737_v3, 0.0 }
 0x5d9   : > { %v2756_v15 = vmax.f32 %v2736_v44, 0.0 }
 0x5db   : > { %v4605_v8 = vpop.f32.mrb[52].mxu0  ;;  %4629 = vmatprep.mubr.msk.f32.mxu1 %vm1790_vm4, %v2756_v15 }
 0x5dc   : > { %v2664_v36 = vpop.f32.mrb[53].mxu0  ;;  %4630 = vmatmul.mubr.msk.f32.gmra.mrb[100].mxu1 %vm1790_vm4, %v2757_v56  ;;  %v2719_v20 = vadd.f32 %v4605_v8, %v6085_v19 }
 0x5dd   : > { %4634 = vmatprep.mubr.msk.f32.mxu1 %vm1790_vm4, %v2740_v33  ;;  %v2718_v17 = vadd.f32 %v6085_v19, %v2664_v36  ;;  %v6241_v19 = vld [vmem:[%s6665_s9] ss:$0 sm:$0xff] }
 0x5de   : > { %v2739_v47 = vadd.f32 %v2719_v20, %v5638_v27 }
 0x5df   : > { %v2738_v49 = vadd.f32 %v2718_v17, %v5641_v9 }
 0x5e0   : > { %4635 = vmatmul.mubr.msk.f32.vlgmr.msra.gmra.mrb[86].mxu1 %vm1790_vm4, %v2741_v58  ;;  %v2759_v34 = vmax.f32 %v2739_v47, 0.0 }
 0x5e1   : > { %4637 = vmatprep.mubr.msk.f32.mxu1 %vm1790_vm4, %v2742_v39  ;;  %4659 = vmatpush3.msra.mxu1 %v6103_v29  ;;  %v2758_v32 = vmax.f32 %v2738_v49, 0.0 }
 0x5e4   : > { %4638 = vmatmul.mubr.msk.f32.gmra.mrb[88].mxu1 %vm1790_vm4, %v2743_v46 }
 0x5e5   : > { %4640 = vmatprep.mubr.msk.f32.mxu1 %vm1790_vm4, %v6113_v43 }
 0x5e8   : > { %4641 = vmatmul.mubr.msk.f32.gmra.mrb[90].mxu1 %vm1790_vm4, %v6115_v4 }
 0x5e9   : > { %4643 = vmatprep.mubr.msk.f32.mxu1 %vm1790_vm4, %v6125_v62 }
 0x5ec   : > { %4644 = vmatmul.mubr.msk.f32.gmra.mrb[92].mxu1 %vm1790_vm4, %v6127_v48 }
 0x5ed   : > { %4646 = vmatprep.mubr.msk.f32.mxu1 %vm1790_vm4, %v6137_v50 }
 0x5f0   : > { %4647 = vmatmul.mubr.msk.f32.gmra.mrb[94].mxu1 %vm1790_vm4, %v6139_v7 }
 0x5f1   : > { %4649 = vmatprep.mubr.msk.f32.mxu1 %vm1790_vm4, %v6149_v10 }
 0x5f4   : > { %4650 = vmatmul.mubr.msk.f32.gmra.mrb[96].mxu1 %vm1790_vm4, %v6151_v5 }
 0x5f5   : > { %4652 = vmatprep.mubr.msk.f32.mxu1 %vm1790_vm4, %v2752_v13 }
 0x5f8   : > { %4653 = vmatmul.mubr.msk.f32.gmra.mrb[98].mxu1 %vm1790_vm4, %v2753_v30 }
 0x5f9   : > { %4655 = vmatprep.mubr.msk.f32.mxu1 %vm1790_vm4, %v2754_v52 }
 0x5fc   : > { %4656 = vmatmul.mubr.msk.f32.gmra.mrb[100].mxu1 %vm1790_vm4, %v2755_v0 }
 0x5fd   : > { %4660 = vmatprep.mubr.msk.f32.mxu1 %vm1790_vm4, %v6113_v43 }
 0x600   : > { %4661 = vmatmul.mubr.msk.f32.vlgmr.msra.gmra.mrb[86].mxu1 %vm1790_vm4, %v6115_v4 }
 0x601   : > { %4663 = vmatprep.mubr.msk.f32.mxu1 %vm1790_vm4, %v6125_v62 }
 0x604   : > { %4664 = vmatmul.mubr.msk.f32.gmra.mrb[88].mxu1 %vm1790_vm4, %v6127_v48 }
 0x605   : > { %4666 = vmatprep.mubr.msk.f32.mxu1 %vm1790_vm4, %v6137_v50 }
 0x608   : > { %4667 = vmatmul.mubr.msk.f32.gmra.mrb[90].mxu1 %vm1790_vm4, %v6139_v7 }
 0x609   : > { %4669 = vmatprep.mubr.msk.f32.mxu1 %vm1790_vm4, %v6149_v10 }
 0x60c   : > { %4670 = vmatmul.mubr.msk.f32.gmra.mrb[92].mxu1 %vm1790_vm4, %v6151_v5 }
 0x60d   : > { %4672 = vmatprep.mubr.msk.f32.mxu1 %vm1790_vm4, %v2752_v13 }
 0x610   : > { %4673 = vmatmul.mubr.msk.f32.gmra.mrb[94].mxu1 %vm1790_vm4, %v2753_v30 }
 0x611   : > { %4675 = vmatprep.mubr.msk.f32.mxu1 %vm1790_vm4, %v2754_v52 }
 0x614   : > { %4676 = vmatmul.mubr.msk.f32.gmra.mrb[96].mxu1 %vm1790_vm4, %v2755_v0 }
 0x615   : > { %4678 = vmatprep.mubr.msk.f32.mxu1 %vm1790_vm4, %v2756_v15 }
 0x618   : > { %4679 = vmatmul.mubr.msk.f32.gmra.mrb[98].mxu1 %vm1790_vm4, %v2757_v56 }
 0x619   : > { %4681 = vmatprep.mubr.msk.f32.mxu1 %vm1790_vm4, %v2758_v32 }
 0x61c   : > { %4682 = vmatmul.mubr.msk.f32.gmra.mrb[100].mxu1 %vm1790_vm4, %v2759_v34 }
 0x6d3   : > { %v4662_v9 = vpop.f32.mrb[86].mxu1 }
 0x6d4   : > { %v6244_v39 = vadd.f32 %v4662_v9, %v6241_v19  ;;  %v3181_v46 = vpop.f32.mrb[87].mxu1 }
 0x6d5   : > { %v6247_v27 = vadd.f32 %v6241_v19, %v3181_v46 }
 0x6d6   : > { %v4160_v29 = vmul.f32 -1.442695, %v6244_v39 }
 0x6d7   : > { %v4159_v43 = vmul.f32 -1.442695, %v6247_v27  ;;  %v4665_v4 = vpop.f32.mrb[88].mxu1 }
 0x6d8   : > { %5004 = vpow2.f32 %v4160_v29  ;;  %v6252_v62 = vadd.f32 %v4665_v4, %v6241_v19  ;;  %v3191_v48 = vpop.f32.mrb[89].mxu1 }
 0x6d9   : > { %5006 = vpow2.f32 %v4159_v43  ;;  %v6255_v38 = vadd.f32 %v6241_v19, %v3191_v48 }
 0x6da   : > { %v4162_v1 = vmul.f32 -1.442695, %v6252_v62 }
 0x6db   : > { %v4161_v42 = vmul.f32 -1.442695, %v6255_v38  ;;  %v4668_v6 = vpop.f32.mrb[90].mxu1 }
 0x6dc   : > { %5008 = vpow2.f32 %v4162_v1  ;;  %v6260_v40 = vadd.f32 %v4668_v6, %v6241_v19  ;;  %v3201_v45 = vpop.f32.mrb[91].mxu1 }
 0x6dd   : > { %5010 = vpow2.f32 %v4161_v42  ;;  %v6263_v50 = vadd.f32 %v6241_v19, %v3201_v45 }
 0x6de   : > { %v4164_v7 = vmul.f32 -1.442695, %v6260_v40 }
 0x6df   : > { %v4163_v41 = vmul.f32 -1.442695, %v6263_v50  ;;  %v4671_v31 = vpop.f32.mrb[92].mxu1 }
 0x6e0   : > { %5012 = vpow2.f32 %v4164_v7  ;;  %v6268_v54 = vadd.f32 %v4671_v31, %v6241_v19  ;;  %v3211_v63 = vpop.f32.mrb[93].mxu1 }
 0x6e1   : > { %5014 = vpow2.f32 %v4163_v41  ;;  %v6271_v51 = vadd.f32 %v6241_v19, %v3211_v63 }
 0x6e2   : > { %v5005_v53 = vpop.eup %5004  ;;  %v4166_v10 = vmul.f32 -1.442695, %v6268_v54 }
 0x6e3   : > { %v5007_v5 = vpop.eup %5006  ;;  %v3348_v11 = vadd.f32 1.0, %v5005_v53  ;;  %v4165_v18 = vmul.f32 -1.442695, %v6271_v51  ;;  %v4674_v12 = vpop.f32.mrb[94].mxu1 }
 0x6e4   : > { %v3347_v16 = vadd.f32 1.0, %v5007_v5  ;;  %5016 = vpow2.f32 %v4166_v10  ;;  %v6276_v57 = vadd.f32 %v4674_v12, %v6241_v19  ;;  %v3221_v60 = vpop.f32.mrb[95].mxu1 }
 0x6e5   : > { %5018 = vrcp.f32 %v3348_v11  ;;  %v6279_v13 = vadd.f32 %v6241_v19, %v3221_v60 }
 0x6e6   : > { %v5009_v30 = vpop.eup %5008  ;;  %5020 = vrcp.f32 %v3347_v16  ;;  %v4168_v14 = vmul.f32 -1.442695, %v6276_v57 }
 0x6e7   : > { %v5011_v24 = vpop.eup %5010  ;;  %v3350_v21 = vadd.f32 1.0, %v5009_v30  ;;  %5022 = vpow2.f32 %v4165_v18  ;;  %v4167_v22 = vmul.f32 -1.442695, %v6279_v13  ;;  %v4677_v25 = vpop.f32.mrb[96].mxu1 }
 0x6e8   : > { %v3349_v28 = vadd.f32 1.0, %v5011_v24  ;;  %5024 = vpow2.f32 %v4168_v14  ;;  %v6284_v52 = vadd.f32 %v4677_v25, %v6241_v19  ;;  %v3231_v0 = vpop.f32.mrb[97].mxu1 }
 0x6e9   : > { %5026 = vrcp.f32 %v3350_v21  ;;  %v6287_v37 = vadd.f32 %v6241_v19, %v3231_v0 }
 0x6ea   : > { %v5013_v23 = vpop.eup %5012  ;;  %5028 = vrcp.f32 %v3349_v28  ;;  %v4170_v59 = vmul.f32 -1.442695, %v6284_v52 }
 0x6eb   : > { %v5015_v26 = vpop.eup %5014  ;;  %v3352_v55 = vadd.f32 1.0, %v5013_v23  ;;  %5030 = vpow2.f32 %v4167_v22  ;;  %v4169_v35 = vmul.f32 -1.442695, %v6287_v37  ;;  %v4680_v3 = vpop.f32.mrb[98].mxu1 }
 0x6ec   : > { %v3351_v61 = vadd.f32 1.0, %v5015_v26  ;;  %5032 = vpow2.f32 %v4170_v59  ;;  %v6292_v44 = vadd.f32 %v4680_v3, %v6241_v19  ;;  %v3241_v15 = vpop.f32.mrb[99].mxu1 }
 0x6ed   : > { %5034 = vrcp.f32 %v3352_v55  ;;  %v6295_v2 = vadd.f32 %v6241_v19, %v3241_v15 }
 0x6ee   : > { %v5017_v56 = vpop.eup %5016  ;;  %5036 = vrcp.f32 %v3351_v61  ;;  %v4172_v33 = vmul.f32 -1.442695, %v6292_v44 }
 0x6ef   : > { %v5019_v8 = vpop.eup %5018  ;;  %v3354_v36 = vadd.f32 1.0, %v5017_v56  ;;  %5038 = vpow2.f32 %v4169_v35  ;;  %v4171_v58 = vmul.f32 -1.442695, %v6295_v2  ;;  %v4683_v17 = vpop.f32.mrb[100].mxu1 }
 0x6f0   : > { %v5021_v20 = vpop.eup %5020  ;;  %5040 = vpow2.f32 %v4172_v33  ;;  %v6300_v49 = vadd.f32 %v4683_v17, %v6241_v19  ;;  %3413 = vrot.lane.b32.xlu1 %v5019_v8, %s5148_s29  ;;  %v3251_v47 = vpop.f32.mrb[101].mxu1 }
 0x6f1   : > { %v5023_v32 = vpop.eup %5022  ;;  %5042 = vrcp.f32 %v3354_v36  ;;  %v6304_v34 = vadd.f32 %v6241_v19, %v3251_v47  ;;  %3411 = vrot.lane.b32.xlu0 %v5021_v20, %s5148_s29 }
 0x6f2   : > { %v5025_v9 = vpop.eup %5024  ;;  %v3353_v46 = vadd.f32 1.0, %v5023_v32  ;;  %5044 = vpow2.f32 %v4171_v58  ;;  %v4174_v29 = vmul.f32 -1.442695, %v6300_v49 }
 0x6f3   : > { %v5027_v43 = vpop.eup %5026  ;;  %v3356_v4 = vadd.f32 1.0, %v5025_v9  ;;  %v4173_v48 = vmul.f32 -1.442695, %v6304_v34 }
 0x6f4   : > { %v5029_v1 = vpop.eup %5028  ;;  %5046 = vrcp.f32 %v3353_v46  ;;  %3417 = vrot.lane.b32.xlu1 %v5027_v43, %s5148_s29 }
 0x6f5   : > { %v5031_v42 = vpop.eup %5030  ;;  %5048 = vrcp.f32 %v3356_v4  ;;  %3415 = vrot.lane.b32.xlu0 %v5029_v1, %s5148_s29 }
 0x6f6   : > { %v5033_v19 = vpop.eup %5032  ;;  %v3355_v6 = vadd.f32 1.0, %v5031_v42  ;;  %5050 = vpow2.f32 %v4174_v29 }
 0x6f7   : > { %v5035_v45 = vpop.eup %5034  ;;  %v3358_v7 = vadd.f32 1.0, %v5033_v19  ;;  %5052 = vpow2.f32 %v4173_v48 }
 0x6f8   : > { %v5037_v41 = vpop.eup %5036  ;;  %5054 = vrcp.f32 %v3355_v6  ;;  %3421 = vrot.lane.b32.xlu1 %v5035_v45, %s5148_s29 }
 0x6f9   : > { %v5039_v31 = vpop.eup %5038  ;;  %5056 = vrcp.f32 %v3358_v7  ;;  %3419 = vrot.lane.b32.xlu0 %v5037_v41, %s5148_s29 }
 0x6fa   : > { %v5041_v63 = vpop.eup %5040  ;;  %v3357_v53 = vadd.f32 1.0, %v5039_v31 }
 0x6fb   : > { %v5043_v10 = vpop.eup %5042  ;;  %v3360_v5 = vadd.f32 1.0, %v5041_v63 }
 0x6fc   : > { %v5045_v11 = vpop.eup %5044  ;;  %5058 = vrcp.f32 %v3357_v53  ;;  %3425 = vrot.lane.b32.xlu1 %v5043_v10, %s5148_s29 }
 0x6fd   : > { %5060 = vrcp.f32 %v3360_v5  ;;  %v3359_v18 = vadd.f32 1.0, %v5045_v11 }
 0x6fe   : > { %v5047_v12 = vpop.eup %5046 }
 0x6ff   : > { %v5049_v16 = vpop.eup %5048  ;;  %5062 = vrcp.f32 %v3359_v18  ;;  %3423 = vrot.lane.b32.xlu0 %v5047_v12, %s5148_s29 }
 0x700   : > { %v5051_v60 = vpop.eup %5050  ;;  %3429 = vrot.lane.b32.xlu1 %v5049_v16, %s5148_s29 }
 0x701   : > { %v5053_v30 = vpop.eup %5052  ;;  %v3362_v14 = vadd.f32 1.0, %v5051_v60 }
 0x702   : > { %v5055_v24 = vpop.eup %5054  ;;  %v3361_v21 = vadd.f32 1.0, %v5053_v30 }
 0x703   : > { %v5057_v22 = vpop.eup %5056  ;;  %5064 = vrcp.f32 %v3362_v14  ;;  %3427 = vrot.lane.b32.xlu0 %v5055_v24, %s5148_s29 }
 0x704   : > { %5066 = vrcp.f32 %v3361_v21  ;;  %3433 = vrot.lane.b32.xlu1 %v5057_v22, %s5148_s29 }
 0x706   : > { %v5059_v25 = vpop.eup %5058 }
 0x707   : > { %v5061_v28 = vpop.eup %5060  ;;  %3431 = vrot.lane.b32.xlu0 %v5059_v25, %s5148_s29 }
 0x708   : > { %3437 = vrot.lane.b32.xlu1 %v5061_v28, %s5148_s29 }
 0x709   : > { %v5063_v0 = vpop.eup %5062 }
 0x70b   : > { %3435 = vrot.lane.b32.xlu0 %v5063_v0, %s5148_s29 }
 0x70d   : > { %v5065_v23 = vpop.eup %5064 }
 0x70e   : > { %v5067_v59 = vpop.eup %5066  ;;  %3441 = vrot.lane.b32.xlu1 %v5065_v23, %s5148_s29 }
 0x70f   : > { %3439 = vrot.lane.b32.xlu0 %v5067_v59, %s5148_s29  ;;  %s404_s29 = sand.u32 1, %s5138_s22  }
 0x710   : > { %s3896_s26 = sshll.u32 %s404_s29, 7  ;;  %s6615_s25 = scalar_lea.sflag [#allocation3], %s404_s29 }
 0x711   : > { %s6528_s18 = scalar_lea.vmem [#allocation2], %s3896_s26  ;;  %s5090_s26 = scalar_lea.vmem %s5089_s19, 4096 }
 0x712   : > { %s3830_s20 = sshll.u32 %s6528_s18, 4  ;;  %s6605_s20 = int_to_ptr.vmem [resolvable:$true] %s3830_s20 }
 0x713   : > { %s5084_s16 = scalar_lea.vmem %s6605_s20, 2048  ;;  %p5091_p0 = scmp.lt.s32.totalorder %s6605_s20, %s5089_s19 }
 0x714   : > { %p5085_p11 = scmp.ne.s32.totalorder %s6605_s20, %s5084_s16  ;;  %p5092_p1 = scmp.lt.s32.totalorder %s5090_s26, %s5084_s16 }
 0x716   : > { %p5086_p12 = pnand %p5085_p11, %p5256_p5  ;;  %p5093_p2 = por %p5092_p1, %p5091_p0 }
 0x718   : > { %p5087_p13 = pneg %p5086_p12 }
 0x71a   : > { %p5094_p3 = pnand %p5093_p2, %p5087_p13 }
 0x762   : > { %v3414_v26 = vpop.permute.xlu1 %3413 }
 0x763   : > { %v6324_v55 = vmul.f32 %v3414_v26, %v6244_v39  ;;  %v3412_v35 = vpop.permute.xlu0 %3411 }
 0x764   : > { %v6327_v3 = vmul.f32 %v3412_v35, %v6247_v27 }
 0x765   : > { %v3478_v61 = vsel %vm1295_vm2, %v6324_v55, 0.0 }
 0x766   : > { %v3418_v15 = vpop.permute.xlu1 %3417  ;;  %3479 = vadd.xlane.f32.xlu1 %v3478_v61  ;;  %v3475_v56 = vsel %vm1295_vm2, %v6327_v3, 0.0 }
 0x767   : > { %v6334_v33 = vmul.f32 %v3418_v15, %v6252_v62  ;;  %v3416_v8 = vpop.permute.xlu0 %3415  ;;  %3476 = vadd.xlane.f32.xlu0 %v3475_v56 }
 0x768   : > { %v6339_v36 = vmul.f32 %v3416_v8, %v6255_v38 }
 0x769   : > { %v3484_v39 = vsel %vm1295_vm2, %v6334_v33, 0.0 }
 0x76a   : > { %v3422_v27 = vpop.permute.xlu1 %3421  ;;  %v3481_v32 = vsel %vm1295_vm2, %v6339_v36, 0.0 }
 0x76b   : > { %v3420_v58 = vpop.permute.xlu0 %3419  ;;  %3485 = vadd.xlane.f32.xlu0 %v3484_v39  ;;  %v6345_v20 = vmul.f32 %v3422_v27, %v6260_v40 }
 0x76c   : > { %v6342_v17 = vmul.f32 %v3420_v58, %v6263_v50 }
 0x76d   : > { %v3490_v40 = vsel %vm1295_vm2, %v6345_v20, 0.0 }
 0x76e   : > { %v3426_v47 = vpop.permute.xlu1 %3425  ;;  %v3487_v62 = vsel %vm1295_vm2, %v6342_v17, 0.0 }
 0x76f   : > { %3488 = vadd.xlane.f32.xlu1 %v3487_v62  ;;  %3482 = vadd.xlane.f32.xlu0 %v3481_v32  ;;  %v6352_v9 = vmul.f32 %v3426_v47, %v6268_v54 }
 0x771   : > { %v3424_v38 = vpop.permute.xlu0 %3423 }
 0x772   : > { %v6355_v46 = vmul.f32 %v3424_v38, %v6271_v51  ;;  %v3430_v50 = vpop.permute.xlu1 %3429  ;;  %v3496_v51 = vsel %vm1295_vm2, %v6352_v9, 0.0 }
 0x773   : > { %3491 = vadd.xlane.f32.xlu0 %v3490_v40  ;;  %v6362_v4 = vmul.f32 %v3430_v50, %v6276_v57 }
 0x774   : > { %v3493_v29 = vsel %vm1295_vm2, %v6355_v46, 0.0 }
 0x775   : > { %v3428_v43 = vpop.permute.xlu0 %3427  ;;  %3494 = vadd.xlane.f32.xlu1 %v3493_v29 }
 0x776   : > { %v6365_v48 = vmul.f32 %v3428_v43, %v6279_v13  ;;  %v3434_v54 = vpop.permute.xlu1 %3433  ;;  %v3502_v13 = vsel %vm1295_vm2, %v6362_v4, 0.0 }
 0x777   : > { %3497 = vadd.xlane.f32.xlu0 %v3496_v51  ;;  %v6372_v19 = vmul.f32 %v3434_v54, %v6284_v52 }
 0x778   : > { %v3499_v1 = vsel %vm1295_vm2, %v6365_v48, 0.0 }
 0x779   : > { %v3432_v42 = vpop.permute.xlu0 %3431  ;;  %3500 = vadd.xlane.f32.xlu1 %v3499_v1  ;;  %v3508_v52 = vsel %vm1295_vm2, %v6372_v19, 0.0 }
 0x77a   : > { %v6375_v6 = vmul.f32 %v3432_v42, %v6287_v37  ;;  %v3438_v57 = vpop.permute.xlu1 %3437 }
 0x77b   : > { %3503 = vadd.xlane.f32.xlu0 %v3502_v13  ;;  %v6382_v41 = vmul.f32 %v3438_v57, %v6292_v44 }
 0x77c   : > { %v3505_v45 = vsel %vm1295_vm2, %v6375_v6, 0.0 }
 0x77d   : > { %v3436_v7 = vpop.permute.xlu0 %3435  ;;  %3506 = vadd.xlane.f32.xlu1 %v3505_v45  ;;  %v3514_v44 = vsel %vm1295_vm2, %v6382_v41, 0.0 }
 0x77e   : > { %v6385_v31 = vmul.f32 %v3436_v7, %v6295_v2 }
 0x77f   : > { %3509 = vadd.xlane.f32.xlu0 %v3508_v52 }
 0x780   : > { %v3442_v37 = vpop.permute.xlu1 %3441  ;;  %v3511_v63 = vsel %vm1295_vm2, %v6385_v31, 0.0 }
 0x781   : > { %3512 = vadd.xlane.f32.xlu1 %v3511_v63  ;;  %v3440_v53 = vpop.permute.xlu0 %3439  ;;  %v6392_v10 = vmul.f32 %v3442_v37, %v6300_v49 }
 0x782   : > { %v6395_v5 = vmul.f32 %v3440_v53, %v6304_v34 }
 0x783   : > { %3515 = vadd.xlane.f32.xlu0 %v3514_v44  ;;  %v3520_v11 = vsel %vm1295_vm2, %v6392_v10, 0.0 }
 0x784   : > { %v3517_v2 = vsel %vm1295_vm2, %v6395_v5, 0.0 }
 0x785   : > { %3518 = vadd.xlane.f32.xlu1 %v3517_v2 }
 0x787   : > { %3521 = vadd.xlane.f32.xlu0 %v3520_v11 }
 0x7f3   : > { %v3480_v18 = vpop.xlane.xlu1 %3479 }
 0x7f4   : > { %v3477_v12 = vpop.xlane.xlu0 %3476 }
 0x7f5   : > { %v3523_v16 = vadd.f32 %v3480_v18, %v3477_v12 }
 0x7f7   : > { %v3524_v49 = vrot.slane %v3523_v16, 4 }
 0x7f8   : > { %v3486_v60 = vpop.xlane.xlu0 %3485 }
 0x7f9   : > { %v3525_v30 = vadd.f32 %v3524_v49, %v3523_v16 }
 0x7fb   : > { %v3526_v34 = vrot.slane %v3525_v30, 2 }
 0x7fc   : > { %v3489_v14 = vpop.xlane.xlu1 %3488  ;;  %v3483_v24 = vpop.xlane.xlu0 %3482 }
 0x7fd   : > { %v3527_v21 = vadd.f32 %v3526_v34, %v3525_v30  ;;  %v3530_v22 = vadd.f32 %v3486_v60, %v3483_v24 }
 0x7ff   : > { %v3528_v25 = vrot.slane %v3527_v21, 1  ;;  %v3531_v28 = vrot.slane %v3530_v22, 4 }
 0x800   : > { %v3492_v0 = vpop.xlane.xlu0 %3491 }
 0x801   : > { %v3529_v23 = vadd.f32 %v3528_v25, %v3527_v21  ;;  %v3532_v59 = vadd.f32 %v3531_v28, %v3530_v22  ;;  %v3537_v26 = vadd.f32 %v3492_v0, %v3489_v14 }
 0x802   : > { %v3495_v35 = vpop.xlane.xlu1 %3494 }
 0x803   : > { %v3533_v61 = vrot.slane %v3532_v59, 2  ;;  %v3538_v15 = vrot.slane %v3537_v26, 4  ;;  %v3580_v56 = vmul.f32 0.00390625, %v3529_v23 }
 0x804   : > { %v3498_v8 = vpop.xlane.xlu0 %3497 }
 0x805   : > { %v3534_v39 = vadd.f32 %v3533_v61, %v3532_v59  ;;  %v3539_v27 = vadd.f32 %v3538_v15, %v3537_v26  ;;  %v3544_v58 = vadd.f32 %v3498_v8, %v3495_v35  ;;  %v6404_v47 = vsub.f32 %v6324_v55, %v3580_v56 }
 0x806   : > { %v3501_v62 = vpop.xlane.xlu1 %3500  ;;  %v6407_v32 = vsub.f32 %v6327_v3, %v3580_v56 }
 0x807   : > { %v3535_v38 = vrot.slane %v3534_v39, 1  ;;  %v3540_v50 = vrot.slane %v3539_v27, 2  ;;  %v3545_v40 = vrot.slane %v3544_v58, 4  ;;  %v3605_v29 = vmul.f32 %v6404_v47, %v6404_v47 }
 0x808   : > { %v3504_v43 = vpop.xlane.xlu0 %3503  ;;  %v3604_v54 = vmul.f32 %v6407_v32, %v6407_v32 }
 0x809   : > { %v3536_v51 = vadd.f32 %v3535_v38, %v3534_v39  ;;  %v3541_v1 = vadd.f32 %v3540_v50, %v3539_v27  ;;  %v3546_v42 = vadd.f32 %v3545_v40, %v3544_v58  ;;  %v3551_v57 = vadd.f32 %v3504_v43, %v3501_v62 }
 0x80a   : > { %v3507_v55 = vpop.xlane.xlu1 %3506  ;;  %v3623_v13 = vsel %vm1295_vm2, %v3605_v29, 0.0  ;;  %v3620_v3 = vsel %vm1295_vm2, %v3604_v54, 0.0 }
 0x80b   : > { %v3542_v45 = vrot.slane %v3541_v1, 1  ;;  %v3547_v7 = vrot.slane %v3546_v42, 2  ;;  %v3552_v52 = vrot.slane %v3551_v57, 4  ;;  %3624 = vadd.xlane.f32.xlu0 %v3623_v13  ;;  %3621 = vadd.xlane.f32.xlu1 %v3620_v3  ;;  %v3581_v37 = vmul.f32 0.00390625, %v3536_v51 }
 0x80c   : > { %v3510_v63 = vpop.xlane.xlu0 %3509 }
 0x80d   : > { %v3543_v53 = vadd.f32 %v3542_v45, %v3541_v1  ;;  %v3548_v44 = vadd.f32 %v3547_v7, %v3546_v42  ;;  %v3553_v2 = vadd.f32 %v3552_v52, %v3551_v57  ;;  %v3558_v11 = vadd.f32 %v3510_v63, %v3507_v55 }
 0x80e   : > { %v3513_v18 = vpop.xlane.xlu1 %3512  ;;  %v6416_v12 = vsub.f32 %v6334_v33, %v3581_v37  ;;  %v6419_v16 = vsub.f32 %v6339_v36, %v3581_v37 }
 0x80f   : > { %v3549_v49 = vrot.slane %v3548_v44, 1  ;;  %v3554_v60 = vrot.slane %v3553_v2, 2  ;;  %v3559_v30 = vrot.slane %v3558_v11, 4  ;;  %v3582_v34 = vmul.f32 0.00390625, %v3543_v53 }
 0x810   : > { %v3516_v14 = vpop.xlane.xlu0 %3515  ;;  %v3607_v24 = vmul.f32 %v6416_v12, %v6416_v12  ;;  %v3606_v21 = vmul.f32 %v6419_v16, %v6419_v16 }
 0x811   : > { %v3550_v22 = vadd.f32 %v3549_v49, %v3548_v44  ;;  %v3555_v25 = vadd.f32 %v3554_v60, %v3553_v2  ;;  %v3560_v28 = vadd.f32 %v3559_v30, %v3558_v11  ;;  %v3565_v0 = vadd.f32 %v3516_v14, %v3513_v18 }
 0x812   : > { %v3629_v33 = vsel %vm1295_vm2, %v3607_v24, 0.0  ;;  %v3626_v36 = vsel %vm1295_vm2, %v3606_v21, 0.0  ;;  %v6428_v23 = vsub.f32 %v6345_v20, %v3582_v34  ;;  %v6431_v59 = vsub.f32 %v6342_v17, %v3582_v34  ;;  %v3519_v56 = vpop.xlane.xlu1 %3518 }
 0x813   : > { %v3556_v26 = vrot.slane %v3555_v25, 1  ;;  %v3561_v35 = vrot.slane %v3560_v28, 2  ;;  %v3566_v61 = vrot.slane %v3565_v0, 4  ;;  %3630 = vadd.xlane.f32.xlu0 %v3629_v33  ;;  %3627 = vadd.xlane.f32.xlu1 %v3626_v36  ;;  %v3583_v15 = vmul.f32 0.00390625, %v3550_v22 }
 0x814   : > { %v3522_v8 = vpop.xlane.xlu0 %3521  ;;  %v3609_v39 = vmul.f32 %v6428_v23, %v6428_v23  ;;  %v3608_v27 = vmul.f32 %v6431_v59, %v6431_v59 }
 0x815   : > { %v3557_v58 = vadd.f32 %v3556_v26, %v3555_v25  ;;  %v3562_v20 = vadd.f32 %v3561_v35, %v3560_v28  ;;  %v3567_v62 = vadd.f32 %v3566_v61, %v3565_v0  ;;  %v3572_v38 = vadd.f32 %v3522_v8, %v3519_v56 }
 0x816   : > { %v3635_v17 = vsel %vm1295_vm2, %v3609_v39, 0.0  ;;  %v3632_v50 = vsel %vm1295_vm2, %v3608_v27, 0.0  ;;  %v6440_v40 = vsub.f32 %v6352_v9, %v3583_v15  ;;  %v6443_v29 = vsub.f32 %v6355_v46, %v3583_v15 }
 0x817   : > { %v3563_v43 = vrot.slane %v3562_v20, 1  ;;  %v3568_v54 = vrot.slane %v3567_v62, 2  ;;  %v3573_v51 = vrot.slane %v3572_v38, 4  ;;  %3636 = vadd.xlane.f32.xlu0 %v3635_v17  ;;  %3633 = vadd.xlane.f32.xlu1 %v3632_v50  ;;  %v3584_v1 = vmul.f32 0.00390625, %v3557_v58 }
 0x818   : > { %v3611_v42 = vmul.f32 %v6440_v40, %v6440_v40  ;;  %v3610_v57 = vmul.f32 %v6443_v29, %v6443_v29 }
 0x819   : > { %v3564_v55 = vadd.f32 %v3563_v43, %v3562_v20  ;;  %v3569_v13 = vadd.f32 %v3568_v54, %v3567_v62  ;;  %v3574_v3 = vadd.f32 %v3573_v51, %v3572_v38  ;;  %v6450_v9 = vsub.f32 %v6362_v4, %v3584_v1 }
 0x81a   : > { %v3641_v46 = vsel %vm1295_vm2, %v3611_v42, 0.0  ;;  %v3638_v45 = vsel %vm1295_vm2, %v3610_v57, 0.0  ;;  %v6455_v7 = vsub.f32 %v6365_v48, %v3584_v1 }
 0x81b   : > { %v3570_v52 = vrot.slane %v3569_v13, 1  ;;  %v3575_v37 = vrot.slane %v3574_v3, 2  ;;  %3642 = vadd.xlane.f32.xlu0 %v3641_v46  ;;  %3639 = vadd.xlane.f32.xlu1 %v3638_v45  ;;  %v3613_v63 = vmul.f32 %v6450_v9, %v6450_v9  ;;  %v3585_v53 = vmul.f32 0.00390625, %v3564_v55 }
 0x81c   : > { %v3612_v44 = vmul.f32 %v6455_v7, %v6455_v7 }
 0x81d   : > { %v3571_v4 = vadd.f32 %v3570_v52, %v3569_v13  ;;  %v3576_v2 = vadd.f32 %v3575_v37, %v3574_v3  ;;  %v3647_v11 = vsel %vm1295_vm2, %v3613_v63, 0.0  ;;  %v6463_v18 = vsub.f32 %v6372_v19, %v3585_v53 }
 0x81e   : > { %v3644_v48 = vsel %vm1295_vm2, %v3612_v44, 0.0  ;;  %v6467_v49 = vsub.f32 %v6375_v6, %v3585_v53 }
 0x81f   : > { %v3577_v60 = vrot.slane %v3576_v2, 1  ;;  %3648 = vadd.xlane.f32.xlu0 %v3647_v11  ;;  %3645 = vadd.xlane.f32.xlu1 %v3644_v48  ;;  %v3615_v30 = vmul.f32 %v6463_v18, %v6463_v18  ;;  %v3586_v34 = vmul.f32 0.00390625, %v3571_v4 }
 0x820   : > { %v3614_v14 = vmul.f32 %v6467_v49, %v6467_v49 }
 0x821   : > { %v3578_v24 = vadd.f32 %v3577_v60, %v3576_v2  ;;  %v3653_v21 = vsel %vm1295_vm2, %v3615_v30, 0.0  ;;  %v6475_v19 = vsub.f32 %v6382_v41, %v3586_v34  ;;  %v6478_v22 = vsub.f32 %v6385_v31, %v3586_v34 }
 0x822   : > { %v3650_v6 = vsel %vm1295_vm2, %v3614_v14, 0.0 }
 0x823   : > { %3654 = vadd.xlane.f32.xlu0 %v3653_v21  ;;  %3651 = vadd.xlane.f32.xlu1 %v3650_v6  ;;  %v3617_v25 = vmul.f32 %v6475_v19, %v6475_v19  ;;  %v3616_v28 = vmul.f32 %v6478_v22, %v6478_v22  ;;  %v3587_v0 = vmul.f32 0.00390625, %v3578_v24 }
 0x825   : > { %v3659_v33 = vsel %vm1295_vm2, %v3617_v25, 0.0  ;;  %v3656_v36 = vsel %vm1295_vm2, %v3616_v28, 0.0  ;;  %v6488_v41 = vsub.f32 %v6392_v10, %v3587_v0  ;;  %v6491_v31 = vsub.f32 %v6395_v5, %v3587_v0 }
 0x827   : > { %3660 = vadd.xlane.f32.xlu0 %v3659_v33  ;;  %3657 = vadd.xlane.f32.xlu1 %v3656_v36  ;;  %v3619_v26 = vmul.f32 %v6488_v41, %v6488_v41  ;;  %v3618_v35 = vmul.f32 %v6491_v31, %v6491_v31 }
 0x829   : > { %v3665_v61 = vsel %vm1295_vm2, %v3619_v26, 0.0  ;;  %v3662_v15 = vsel %vm1295_vm2, %v3618_v35, 0.0 }
 0x82b   : > { %3666 = vadd.xlane.f32.xlu0 %v3665_v61  ;;  %3663 = vadd.xlane.f32.xlu1 %v3662_v15 }
 0x898   : > { %v3622_v56 = vpop.xlane.xlu1 %3621  ;;  %v3625_v10 = vpop.xlane.xlu0 %3624 }
 0x899   : > { %v3668_v8 = vadd.f32 %v3625_v10, %v3622_v56 }
 0x89b   : > { %v3669_v39 = vrot.slane %v3668_v8, 4 }
 0x89d   : > { %v3670_v5 = vadd.f32 %v3669_v39, %v3668_v8 }
 0x89f   : > { %v3671_v27 = vrot.slane %v3670_v5, 2 }
 0x8a0   : > { %v3628_v58 = vpop.xlane.xlu1 %3627  ;;  %v3631_v20 = vpop.xlane.xlu0 %3630 }
 0x8a1   : > { %v3672_v62 = vadd.f32 %v3671_v27, %v3670_v5  ;;  %v3675_v38 = vadd.f32 %v3631_v20, %v3628_v58  ;;  %v6503_v27 = vld [vmem:[%s6666_s10] sm:$0xff]  ;;  %v6508_v58 = vld [vmem:[%s6666_s10 + $0x8] sm:$0xff] }
 0x8a3   : > { %v3673_v17 = vrot.slane %v3672_v62, 1  ;;  %v3676_v50 = vrot.slane %v3675_v38, 4 }
 0x8a4   : > { %v3634_v43 = vpop.xlane.xlu1 %3633  ;;  %v3637_v54 = vpop.xlane.xlu0 %3636 }
 0x8a5   : > { %v3674_v51 = vadd.f32 %v3673_v17, %v3672_v62  ;;  %v3677_v1 = vadd.f32 %v3676_v50, %v3675_v38  ;;  %v3682_v42 = vadd.f32 %v3637_v54, %v3634_v43 }
 0x8a7   : > { %v3724_v57 = vmul.f32 0.00390625, %v3674_v51  ;;  %v3678_v55 = vrot.slane %v3677_v1, 2  ;;  %v3683_v13 = vrot.slane %v3682_v42, 4  ;;  %v6517_v51 = vld [vmem:[%s6667_s11] sm:$0xff] }
 0x8a8   : > { %v3640_v3 = vpop.xlane.xlu1 %3639  ;;  %v3643_v46 = vpop.xlane.xlu0 %3642 }
 0x8a9   : > { %v3732_v45 = vadd.f32 1e-12, %v3724_v57  ;;  %v3679_v52 = vadd.f32 %v3678_v55, %v3677_v1  ;;  %v3684_v37 = vadd.f32 %v3683_v13, %v3682_v42  ;;  %v3689_v63 = vadd.f32 %v3643_v46, %v3640_v3  ;;  %v6522_v1 = vld [vmem:[%s6667_s11 + $0x8] sm:$0xff] }
 0x8ab   : > { %5068 = vrsqrt.f32 %v3732_v45  ;;  %v3680_v53 = vrot.slane %v3679_v52, 1  ;;  %v3685_v44 = vrot.slane %v3684_v37, 2  ;;  %v3690_v4 = vrot.slane %v3689_v63, 4 }
 0x8ac   : > { %v3646_v2 = vpop.xlane.xlu1 %3645  ;;  %v3649_v11 = vpop.xlane.xlu0 %3648 }
 0x8ad   : > { %v3681_v48 = vadd.f32 %v3680_v53, %v3679_v52  ;;  %v3686_v60 = vadd.f32 %v3685_v44, %v3684_v37  ;;  %v3691_v30 = vadd.f32 %v3690_v4, %v3689_v63  ;;  %v3696_v34 = vadd.f32 %v3649_v11, %v3646_v2 }
 0x8af   : > { %v3725_v14 = vmul.f32 0.00390625, %v3681_v48  ;;  %v3687_v24 = vrot.slane %v3686_v60, 1  ;;  %v3692_v21 = vrot.slane %v3691_v30, 2  ;;  %v3697_v6 = vrot.slane %v3696_v34, 4 }
 0x8b0   : > { %v3652_v25 = vpop.xlane.xlu1 %3651  ;;  %v3655_v28 = vpop.xlane.xlu0 %3654 }
 0x8b1   : > { %v3733_v0 = vadd.f32 1e-12, %v3725_v14  ;;  %v3688_v33 = vadd.f32 %v3687_v24, %v3686_v60  ;;  %v3693_v36 = vadd.f32 %v3692_v21, %v3691_v30  ;;  %v3698_v26 = vadd.f32 %v3697_v6, %v3696_v34 }
 0x8b2   : > { %v3703_v35 = vadd.f32 %v3655_v28, %v3652_v25 }
 0x8b3   : > { %5070 = vrsqrt.f32 %v3733_v0  ;;  %v3726_v61 = vmul.f32 0.00390625, %v3688_v33  ;;  %v3694_v15 = vrot.slane %v3693_v36, 1  ;;  %v3699_v56 = vrot.slane %v3698_v26, 2 }
 0x8b4   : > { %v3704_v10 = vrot.slane %v3703_v35, 4  ;;  %v3658_v8 = vpop.xlane.xlu1 %3657  ;;  %v3661_v39 = vpop.xlane.xlu0 %3660 }
 0x8b5   : > { %v5069_v5 = vpop.eup %5068  ;;  %v3734_v20 = vadd.f32 1e-12, %v3726_v61  ;;  %v3695_v62 = vadd.f32 %v3694_v15, %v3693_v36  ;;  %v3700_v38 = vadd.f32 %v3699_v56, %v3698_v26  ;;  %v3710_v17 = vadd.f32 %v3661_v39, %v3658_v8 }
 0x8b6   : > { %v3748_v50 = vmul.f32 %v5069_v5, %v6407_v32  ;;  %v3749_v43 = vmul.f32 %v5069_v5, %v6404_v47  ;;  %v3705_v54 = vadd.f32 %v3704_v10, %v3703_v35 }
 0x8b7   : > { %5072 = vrsqrt.f32 %v3734_v20  ;;  %v3727_v42 = vmul.f32 0.00390625, %v3695_v62  ;;  %v3701_v57 = vrot.slane %v3700_v38, 1  ;;  %v3711_v55 = vrot.slane %v3710_v17, 4 }
 0x8b8   : > { %v3766_v13 = vmul.f32 %v6503_v27, %v3748_v50  ;;  %v3767_v32 = vmul.f32 %v6508_v58, %v3749_v43  ;;  %v3706_v47 = vrot.slane %v3705_v54, 2  ;;  %v3664_v3 = vpop.xlane.xlu1 %3663  ;;  %v3667_v46 = vpop.xlane.xlu0 %3666 }
 0x8b9   : > { %v3735_v45 = vadd.f32 1e-12, %v3727_v42  ;;  %v3702_v52 = vadd.f32 %v3701_v57, %v3700_v38  ;;  %v3712_v37 = vadd.f32 %v3711_v55, %v3710_v17  ;;  %v3717_v63 = vadd.f32 %v3667_v46, %v3664_v3 }
 0x8ba   : > { %v3784_v53 = vadd.f32 %v6517_v51, %v3766_v13  ;;  %v3785_v44 = vadd.f32 %v6522_v1, %v3767_v32  ;;  %v3707_v4 = vadd.f32 %v3706_v47, %v3705_v54 }
 0x8bb   : > { %5074 = vrsqrt.f32 %v3735_v45  ;;  %v3728_v2 = vmul.f32 0.00390625, %v3702_v52  ;;  %v3713_v11 = vrot.slane %v3712_v37, 2  ;;  %v3718_v48 = vrot.slane %v3717_v63, 4 }
 0x8bc   : > { %3800 = vst.msk [vmem:[%s6528_s18] sm:$0xff] %vm1295_vm2, %v3784_v53  ;;  %3801 = vst.msk [vmem:[%s6528_s18 + $0x8] sm:$0xff] %vm1295_vm2, %v3785_v44  ;;  %v3708_v60 = vrot.slane %v3707_v4, 1 }
 0x8bd   : > { %v5071_v30 = vpop.eup %5070  ;;  %v3736_v34 = vadd.f32 1e-12, %v3728_v2  ;;  %v3714_v14 = vadd.f32 %v3713_v11, %v3712_v37  ;;  %v3719_v24 = vadd.f32 %v3718_v48, %v3717_v63 }
 0x8be   : > { %v3750_v21 = vmul.f32 %v5071_v30, %v6419_v16  ;;  %v3751_v6 = vmul.f32 %v5071_v30, %v6416_v12  ;;  %v3709_v25 = vadd.f32 %v3708_v60, %v3707_v4 }
 0x8bf   : > { %5076 = vrsqrt.f32 %v3736_v34  ;;  %v3715_v28 = vrot.slane %v3714_v14, 1  ;;  %v3720_v0 = vrot.slane %v3719_v24, 2 }
 0x8c0   : > { %v3768_v33 = vmul.f32 %v6503_v27, %v3750_v21  ;;  %v3769_v36 = vmul.f32 %v6508_v58, %v3751_v6  ;;  %v3729_v26 = vmul.f32 0.00390625, %v3709_v25 }
 0x8c1   : > { %v5073_v35 = vpop.eup %5072  ;;  %v3716_v61 = vadd.f32 %v3715_v28, %v3714_v14  ;;  %v3721_v15 = vadd.f32 %v3720_v0, %v3719_v24 }
 0x8c2   : > { %v3786_v56 = vadd.f32 %v6517_v51, %v3768_v33  ;;  %v3787_v16 = vadd.f32 %v6522_v1, %v3769_v36  ;;  %v3752_v12 = vmul.f32 %v5073_v35, %v6431_v59  ;;  %v3753_v10 = vmul.f32 %v5073_v35, %v6428_v23 }
 0x8c3   : > { %v3737_v8 = vadd.f32 1e-12, %v3729_v26  ;;  %v3730_v39 = vmul.f32 0.00390625, %v3716_v61  ;;  %v3722_v5 = vrot.slane %v3721_v15, 1 }
 0x8c4   : > { %3802 = vst.msk [vmem:[%s6528_s18 + $0x10] sm:$0xff] %vm1295_vm2, %v3786_v56  ;;  %3803 = vst.msk [vmem:[%s6528_s18 + $0x18] sm:$0xff] %vm1295_vm2, %v3787_v16  ;;  %v3770_v20 = vmul.f32 %v6503_v27, %v3752_v12  ;;  %v3771_v62 = vmul.f32 %v6508_v58, %v3753_v10 }
 0x8c5   : > { %v5075_v38 = vpop.eup %5074  ;;  %5078 = vrsqrt.f32 %v3737_v8  ;;  %v3738_v17 = vadd.f32 1e-12, %v3730_v39  ;;  %v3723_v50 = vadd.f32 %v3722_v5, %v3721_v15 }
 0x8c6   : > { %v3788_v59 = vadd.f32 %v6517_v51, %v3770_v20  ;;  %v3789_v23 = vadd.f32 %v6522_v1, %v3771_v62  ;;  %v3754_v43 = vmul.f32 %v5075_v38, %v6443_v29  ;;  %v3755_v54 = vmul.f32 %v5075_v38, %v6440_v40 }
 0x8c7   : > { %5080 = vrsqrt.f32 %v3738_v17  ;;  %v3731_v42 = vmul.f32 0.00390625, %v3723_v50 }
 0x8c8   : > { %3804 = vst.msk [vmem:[%s6528_s18 + $0x20] sm:$0xff] %vm1295_vm2, %v3788_v59  ;;  %3805 = vst.msk [vmem:[%s6528_s18 + $0x28] sm:$0xff] %vm1295_vm2, %v3789_v23  ;;  %v3772_v57 = vmul.f32 %v6503_v27, %v3754_v43  ;;  %v3773_v55 = vmul.f32 %v6508_v58, %v3755_v54 }
 0x8c9   : > { %v5077_v13 = vpop.eup %5076  ;;  %v3739_v32 = vadd.f32 1e-12, %v3731_v42 }
 0x8ca   : > { %v3790_v47 = vadd.f32 %v6517_v51, %v3772_v57  ;;  %v3791_v29 = vadd.f32 %v6522_v1, %v3773_v55  ;;  %v3756_v40 = vmul.f32 %v5077_v13, %v6455_v7  ;;  %v3757_v3 = vmul.f32 %v5077_v13, %v6450_v9 }
 0x8cb   : > { %5082 = vrsqrt.f32 %v3739_v32 }
 0x8cc   : > { %3806 = vst.msk [vmem:[%s6528_s18 + $0x30] sm:$0xff] %vm1295_vm2, %v3790_v47  ;;  %3807 = vst.msk [vmem:[%s6528_s18 + $0x38] sm:$0xff] %vm1295_vm2, %v3791_v29  ;;  %v3774_v46 = vmul.f32 %v6503_v27, %v3756_v40  ;;  %v3775_v45 = vmul.f32 %v6508_v58, %v3757_v3 }
 0x8ce   : > { %v3792_v52 = vadd.f32 %v6517_v51, %v3774_v46  ;;  %v3793_v37 = vadd.f32 %v6522_v1, %v3775_v45 }
 0x8cf   : > { %v5079_v63 = vpop.eup %5078 }
 0x8d0   : > { %3808 = vst.msk [vmem:[%s6528_s18 + $0x40] sm:$0xff] %vm1295_vm2, %v3792_v52  ;;  %3809 = vst.msk [vmem:[%s6528_s18 + $0x48] sm:$0xff] %vm1295_vm2, %v3793_v37  ;;  %v3758_v9 = vmul.f32 %v5079_v63, %v6467_v49  ;;  %v3759_v7 = vmul.f32 %v5079_v63, %v6463_v18 }
 0x8d1   : > { %v5081_v53 = vpop.eup %5080 }
 0x8d2   : > { %v3776_v44 = vmul.f32 %v6503_v27, %v3758_v9  ;;  %v3777_v4 = vmul.f32 %v6508_v58, %v3759_v7  ;;  %v3760_v2 = vmul.f32 %v5081_v53, %v6478_v22  ;;  %v3761_v11 = vmul.f32 %v5081_v53, %v6475_v19 }
 0x8d4   : > { %v3794_v48 = vadd.f32 %v6517_v51, %v3776_v44  ;;  %v3795_v60 = vadd.f32 %v6522_v1, %v3777_v4  ;;  %v3778_v49 = vmul.f32 %v6503_v27, %v3760_v2  ;;  %v3779_v18 = vmul.f32 %v6508_v58, %v3761_v11 }
 0x8d5   : > { %v5083_v30 = vpop.eup %5082 }
 0x8d6   : > { %3810 = vst.msk [vmem:[%s6528_s18 + $0x50] sm:$0xff] %vm1295_vm2, %v3794_v48  ;;  %3811 = vst.msk [vmem:[%s6528_s18 + $0x58] sm:$0xff] %vm1295_vm2, %v3795_v60  ;;  %v3796_v22 = vadd.f32 %v6517_v51, %v3778_v49  ;;  %v3797_v19 = vadd.f32 %v6522_v1, %v3779_v18  ;;  %v3762_v34 = vmul.f32 %v5083_v30, %v6491_v31 }
 0x8d7   : > { %v3763_v14 = vmul.f32 %v5083_v30, %v6488_v41 }
 0x8d8   : > { %3812 = vst.msk [vmem:[%s6528_s18 + $0x60] sm:$0xff] %vm1295_vm2, %v3796_v22  ;;  %3813 = vst.msk [vmem:[%s6528_s18 + $0x68] sm:$0xff] %vm1295_vm2, %v3797_v19  ;;  %v3780_v24 = vmul.f32 %v6503_v27, %v3762_v34 }
 0x8d9   : > { %v3781_v21 = vmul.f32 %v6508_v58, %v3763_v14 }
 0x8da   : > { %v3798_v41 = vadd.f32 %v6517_v51, %v3780_v24 }
 0x8db   : > { %v3799_v31 = vadd.f32 %v6522_v1, %v3781_v21 }
 0x8dc   : > { %3814 = vst.msk [vmem:[%s6528_s18 + $0x70] sm:$0xff] %vm1295_vm2, %v3798_v41 }
 0x8dd   : > { %3815 = vst.msk [vmem:[%s6528_s18 + $0x78] sm:$0xff] %vm1295_vm2, %v3799_v31 }
 0x8de   : > { %5097 = shalt.err (!%p5094_p3)
}
 0x8df   : > { %s5098_s29 = scalar_lea.hbm %s6603_s15, 2048  ;;  %s5102_s17 = scalar_lea.hbm %s6668_s12, 4096 }
 0x8e0   : > { %p5099_p4 = scmp.ne.s32.totalorder %s6603_s15, %s5098_s29  ;;  %p5103_p9 = scmp.lt.u32.totalorder %s6603_s15, %s6668_s12 }
 0x8e1   : > { %p5104_p10 = scmp.lt.u32.totalorder %s5102_s17, %s5098_s29  ;;  %p5106_p12 = scmp.lt.u32.totalorder %s5098_s29, %s6603_s15 }
 0x8e2   : > { %p5100_p7 = pnand %p5099_p4, %p5256_p5 }
 0x8e3   : > { %p5105_p11 = por %p5104_p10, %p5103_p9 }
 0x8e4   : > { %p5101_p8 = pneg %p5100_p7 }
 0x8e5   : > { %p5107_p13 = por %p5106_p12, %p5105_p11 }
 0x8e7   : > { %p5108_p0 = pnand %p5107_p13, %p5101_p8 }
 0x8e9   : > { %5111 = shalt.err (!%p5108_p0)
}
 0x8ea   : > { %s5151_s16 = smov 128   ;;  %s5152_s26 = smov 8  }
 0x8eb   : > { %4881 = dma.vmem_to_hbm [thread:$0]  (%p5256_p5), %s6605_s20, 2048, %s6603_s15, %s6615_s25, %s5151_s16, %s5151_s16, %s5152_s26  }
 0x8ec PF: > { %p4887_p1 = scmp.ge.s32.totalorder %s5146_s24, 2  ;;  %s3845_s0 = sand.u32 1, %s5134_s21  }
 0x8ed   : > { %s3846_s29 = scalar_lea.sflag [#allocation3], %s3845_s0 }
 0x8ee   : > { %p4884_p2 = pnand %p4887_p1, %p5260_p6 }
 0x8f0   : > { %5129 = dma.done.wait (!%p4884_p2), %s3846_s29, 2048  }
 0x8f1   : > { %5131 = vsyncadd (!%p4884_p2), %s3846_s29, 4294965248  ;;  %p22_p3 = scmp.ge.s32.totalorder %s5243_s27, 4   ;;  %s6724_s21 = smov %s5138_s22 }
 0x8f2   : > { %s6725_s22 = smov %s5142_s23  ;;  %s6726_s23 = smov %s5254_s30 }
 0x8f3   : > { %s6727_s24 = smov %s5243_s27  ;;  %24 = sbr.rel (!%p22_p3) target bundleno = 5 (0x5), region = 109 }
 0x8fa   :  { %3851 = vsyncpa [#allocation3], 1 }
 0x8fb   :  { %3853 = vsyncpa [#allocation3 + $0x1], 1 }

</bundles_post_ra>
